<compile_context>
chip_gen: v7x
topology: tpu7x:2x2x1
jax: 0.10.0
libtpu: 0.0.40
codegen_flags: <defaults>
</compile_context>

<pallas_src>
import functools
import math

import jax
import jax.numpy as jnp
from jax.experimental import pallas as pl
from jax.experimental.pallas import tpu as pltpu


# ---------------------------------------------------------------------------
# Fused Pallas kernel: one grid step does the whole forward for the batch.
# ---------------------------------------------------------------------------
def _fused_attention_kernel(x_ref, y_ref, wqkv_ref, wproj_ref, bproj_ref,
                            o_ref, *, batch, seq, num_heads, scale):
    M, C = x_ref.shape                       # M == batch * seq
    D = C // num_heads
    dn = (((1,), (1,)), ((), ()))            # contract last dims ==  a @ W.T

    # Stack x (rows [0, M)) and y (rows [M, 2M)) along sublanes -- a pure
    # register-placement concat -- so q/k/v come out of ONE MXU matmul against
    # the stacked (3C, C) weight (nn.Linear weights are (out, in)).
    z = jnp.concatenate([x_ref[...], y_ref[...]], axis=0)             # (2M, C)
    qkv = jax.lax.dot_general(z, wqkv_ref[...], dn,
                              preferred_element_type=jnp.float32)     # (2M, 3C)

    # q comes from the x rows, k / v from the y rows.  The softmax scale is
    # folded into q here (M*C multiplies instead of B*H*N*N on the scores).
    q = qkv[:M, :C] * scale
    k = qkv[M:, C:2 * C]
    v = qkv[M:, 2 * C:]

    # Per-(batch, head) attention as an unrolled static loop of small 2-D
    # matmuls on lane slices -- no (N, H, D) relayout / vxpose is emitted.
    batch_outs = []
    for b in range(batch):
        rows = slice(b * seq, (b + 1) * seq)
        head_outs = []
        for h in range(num_heads):
            cols = slice(h * D, (h + 1) * D)
            qh = q[rows, cols]                                         # (N, D)
            kh = k[rows, cols]                                         # (N, D)
            vh = v[rows, cols]                                         # (N, D)
            # scores = qh @ kh.T  (contract head_dim of both, no transpose op)
            s = jax.lax.dot_general(qh, kh, dn,
                                    preferred_element_type=jnp.float32)  # (N, N)
            s = s - jnp.max(s, axis=-1, keepdims=True)
            p = jnp.exp(s)
            # Softmax normalization via EUP approximate reciprocal (free slot).
            p = p * pl.reciprocal(jnp.sum(p, axis=-1, keepdims=True),
                                  approx=True)
            head_outs.append(jnp.dot(p, vh,
                                     preferred_element_type=jnp.float32))  # (N, D)
        batch_outs.append(jnp.concatenate(head_outs, axis=1))          # (N, C)
    attn_out = jnp.concatenate(batch_outs, axis=0)                     # (M, C)

    # Output projection + bias (attn_drop / proj_drop are identity at p=0.0).
    out = jax.lax.dot_general(attn_out, wproj_ref[...], dn,
                              preferred_element_type=jnp.float32)
    o_ref[...] = (out + bproj_ref[...]).astype(o_ref.dtype)


def attention_forward(x, y, params, num_heads):
    """Fused forward of the PyTorch Attention module (sr_ratio == 1 path)."""
    B, N, C = x.shape
    head_dim = C // num_heads
    scale = head_dim ** (-0.5)
    M = B * N

    # One-time weight prep: stack wq with the untouched wkv -> (3C, C), so the
    # kernel issues a single fused qkv matmul and a single weight DMA.
    w_qkv = jnp.concatenate([params["wq"], params["wkv"]], axis=0)     # (3C, C)
    wproj = params["wproj"]                                            # (C, C)
    bproj = params["bproj"].reshape(1, C)

    x2d = x.reshape(M, C)
    y2d = y.reshape(M, C)

    kernel = functools.partial(_fused_attention_kernel,
                               batch=B, seq=N, num_heads=num_heads, scale=scale)

    out2d = pl.pallas_call(
        kernel,
        out_shape=jax.ShapeDtypeStruct((M, C), x.dtype),
        grid=(1,),
        in_specs=[
            pl.BlockSpec((M, C), lambda i: (0, 0)),        # x  (flattened)
            pl.BlockSpec((M, C), lambda i: (0, 0)),        # y  (flattened)
            pl.BlockSpec((3 * C, C), lambda i: (0, 0)),    # stacked q/k/v weight
            pl.BlockSpec((C, C), lambda i: (0, 0)),        # proj weight
            pl.BlockSpec((1, C), lambda i: (0, 0)),        # proj bias
        ],
        out_specs=pl.BlockSpec((M, C), lambda i: (0, 0)),
        compiler_params=pltpu.CompilerParams(
            dimension_semantics=("arbitrary",)),
    )(x2d, y2d, w_qkv, wproj, bproj)

    return out2d.reshape(B, N, C)


# ---------------------------------------------------------------------------
# Pure-JAX reference for verification
# ---------------------------------------------------------------------------
def attention_reference(x, y, params, num_heads):
    B, N, C = x.shape
    head_dim = C // num_heads
    scale = head_dim ** (-0.5)
    q = (x @ params["wq"].T).reshape(B, N, num_heads, head_dim).transpose(0, 2, 1, 3)
    kv = (y @ params["wkv"].T).reshape(B, N, 2, num_heads, head_dim).transpose(2, 0, 3, 1, 4)
    k, v = kv[0], kv[1]
    attn = jax.nn.softmax(jnp.einsum("bhnd,bhmd->bhnm", q, k) * scale, axis=-1)
    o = jnp.einsum("bhnm,bhmd->bhnd", attn, v).transpose(0, 2, 1, 3).reshape(B, N, C)
    return o @ params["wproj"].T + params["bproj"]


# ---------------------------------------------------------------------------
if __name__ == "__main__":
    B, N, C, num_heads = 2, 16, 32, 8

    key = jax.random.PRNGKey(0)
    kx, ky, k1, k2, k3, k4 = jax.random.split(key, 6)

    x = jax.random.normal(kx, (B, N, C), jnp.float32)
    y = jax.random.normal(ky, (B, N, C), jnp.float32)

    # Deterministic synthetic parameters (PyTorch nn.Linear stores W as (out, in)).
    bound = 1.0 / math.sqrt(C)
    params = {
        "wq":    jax.random.uniform(k1, (C, C),     jnp.float32, -bound, bound),
        "wkv":   jax.random.uniform(k2, (2 * C, C), jnp.float32, -bound, bound),
        "wproj": jax.random.uniform(k3, (C, C),     jnp.float32, -bound, bound),
        "bproj": jax.random.uniform(k4, (C,),       jnp.float32, -bound, bound),
    }

    fwd = jax.jit(functools.partial(attention_forward, num_heads=num_heads))
    out = jax.block_until_ready(fwd(x, y, params))

    ref = attention_reference(x, y, params, num_heads)
    assert out.shape == (B, N, C)
    # Slightly loosened tolerance: the softmax uses the EUP approximate
    # reciprocal (pl.reciprocal(..., approx=True)) instead of exact division.
    assert jnp.allclose(out, ref, atol=2e-3, rtol=2e-3), "mismatch vs reference"

    print("KERNEL_OK")
</pallas_src>

<mosaic_0001>
module attributes {stable_mosaic.version = 11 : i64} {
  func.func @_fused_attention_kernel(%arg0: i32, %arg1: memref<32x32xf32, #tpu.memory_space<vmem>>, %arg2: memref<32x32xf32, #tpu.memory_space<vmem>>, %arg3: memref<96x32xf32, #tpu.memory_space<vmem>>, %arg4: memref<32x32xf32, #tpu.memory_space<vmem>>, %arg5: memref<1x32xf32, #tpu.memory_space<vmem>>, %arg6: memref<32x32xf32, #tpu.memory_space<vmem>>) attributes {dimension_semantics = [#tpu.dimension_semantics<arbitrary>], iteration_bounds = array<i64: 1>, scalar_prefetch = 0 : i64, scratch_operands = 0 : i64, tpu.core_type = #tpu.core_type<tc>, window_params = [{pipeline_mode = #tpu.pipeline_mode<synchronous>, transform_indices = @transform_0, window_bounds = array<i64: 32, 32>}, {pipeline_mode = #tpu.pipeline_mode<synchronous>, transform_indices = @transform_1, window_bounds = array<i64: 32, 32>}, {pipeline_mode = #tpu.pipeline_mode<synchronous>, transform_indices = @transform_2, window_bounds = array<i64: 96, 32>}, {pipeline_mode = #tpu.pipeline_mode<synchronous>, transform_indices = @transform_3, window_bounds = array<i64: 32, 32>}, {pipeline_mode = #tpu.pipeline_mode<synchronous>, transform_indices = @transform_4, window_bounds = array<i64: 1, 32>}, {pipeline_mode = #tpu.pipeline_mode<synchronous>, transform_indices = @transform_5, window_bounds = array<i64: 32, 32>}]} {
    %c0 = arith.constant 0 : index
    %c0_0 = arith.constant 0 : index
    %0 = vector.load %arg1[%c0, %c0_0] : memref<32x32xf32, #tpu.memory_space<vmem>>, vector<32x32xf32>
    %c0_1 = arith.constant 0 : index
    %c0_2 = arith.constant 0 : index
    %1 = vector.load %arg2[%c0_1, %c0_2] : memref<32x32xf32, #tpu.memory_space<vmem>>, vector<32x32xf32>
    %2 = tpu.concatenate %0, %1 in 0 : vector<32x32xf32>, vector<32x32xf32> -> vector<64x32xf32>
    %c0_3 = arith.constant 0 : index
    %c0_4 = arith.constant 0 : index
    %3 = vector.load %arg3[%c0_3, %c0_4] : memref<96x32xf32, #tpu.memory_space<vmem>>, vector<96x32xf32>
    %cst = arith.constant dense<0.000000e+00> : vector<64x96xf32>
    %4 = tpu.matmul %2, %3, %cst {dimension_numbers = #tpu.dot_dimension_numbers<[1], [1], [0], [0], [0, 0, 1, 0], [], []>} : vector<64x32xf32>, vector<96x32xf32>, vector<64x96xf32> -> vector<64x96xf32>
    %5 = vector.extract_strided_slice %4 {offsets = [0, 0], sizes = [32, 32], strides = [1, 1]} : vector<64x96xf32> to vector<32x32xf32>
    %cst_5 = arith.constant 5.000000e-01 : f32
    %6 = vector.broadcast %cst_5 : f32 to vector<32x32xf32>
    %7 = arith.mulf %5, %6 : vector<32x32xf32>
    %8 = vector.extract_strided_slice %4 {offsets = [32, 32], sizes = [32, 32], strides = [1, 1]} : vector<64x96xf32> to vector<32x32xf32>
    %9 = vector.extract_strided_slice %4 {offsets = [32, 64], sizes = [32, 32], strides = [1, 1]} : vector<64x96xf32> to vector<32x32xf32>
    %10 = vector.extract_strided_slice %7 {offsets = [0, 0], sizes = [16, 4], strides = [1, 1]} : vector<32x32xf32> to vector<16x4xf32>
    %11 = vector.extract_strided_slice %8 {offsets = [0, 0], sizes = [16, 4], strides = [1, 1]} : vector<32x32xf32> to vector<16x4xf32>
    %12 = vector.extract_strided_slice %9 {offsets = [0, 0], sizes = [16, 4], strides = [1, 1]} : vector<32x32xf32> to vector<16x4xf32>
    %cst_6 = arith.constant dense<0.000000e+00> : vector<16x16xf32>
    %13 = tpu.matmul %10, %11, %cst_6 {dimension_numbers = #tpu.dot_dimension_numbers<[1], [1], [0], [0], [0, 0, 1, 0], [], []>} : vector<16x4xf32>, vector<16x4xf32>, vector<16x16xf32> -> vector<16x16xf32>
    %cst_7 = arith.constant dense<0xFF800000> : vector<16xf32>
    %14 = vector.multi_reduction <maximumf>, %13, %cst_7 [1] : vector<16x16xf32> to vector<16xf32>
    %15 = vector.shape_cast %14 : vector<16xf32> to vector<16x1xf32>
    %16 = vector.broadcast %15 : vector<16x1xf32> to vector<16x16xf32>
    %17 = arith.subf %13, %16 : vector<16x16xf32>
    %18 = math.exp %17 : vector<16x16xf32>
    %cst_8 = arith.constant dense<0.000000e+00> : vector<16xf32>
    %19 = vector.multi_reduction <add>, %18, %cst_8 [1] : vector<16x16xf32> to vector<16xf32>
    %20 = vector.shape_cast %19 : vector<16xf32> to vector<16x1xf32>
    %21 = tpu.reciprocal %20 {approx = true} : vector<16x1xf32> -> vector<16x1xf32>
    %22 = vector.broadcast %21 : vector<16x1xf32> to vector<16x16xf32>
    %23 = arith.mulf %18, %22 : vector<16x16xf32>
    %cst_9 = arith.constant dense<0.000000e+00> : vector<16x4xf32>
    %24 = tpu.matmul %23, %12, %cst_9 {dimension_numbers = #tpu.dot_dimension_numbers<[1], [0], [0], [1], [0, 0, 1, 1], [], []>} : vector<16x16xf32>, vector<16x4xf32>, vector<16x4xf32> -> vector<16x4xf32>
    %25 = vector.extract_strided_slice %7 {offsets = [0, 4], sizes = [16, 4], strides = [1, 1]} : vector<32x32xf32> to vector<16x4xf32>
    %26 = vector.extract_strided_slice %8 {offsets = [0, 4], sizes = [16, 4], strides = [1, 1]} : vector<32x32xf32> to vector<16x4xf32>
    %27 = vector.extract_strided_slice %9 {offsets = [0, 4], sizes = [16, 4], strides = [1, 1]} : vector<32x32xf32> to vector<16x4xf32>
    %cst_10 = arith.constant dense<0.000000e+00> : vector<16x16xf32>
    %28 = tpu.matmul %25, %26, %cst_10 {dimension_numbers = #tpu.dot_dimension_numbers<[1], [1], [0], [0], [0, 0, 1, 0], [], []>} : vector<16x4xf32>, vector<16x4xf32>, vector<16x16xf32> -> vector<16x16xf32>
    %cst_11 = arith.constant dense<0xFF800000> : vector<16xf32>
    %29 = vector.multi_reduction <maximumf>, %28, %cst_11 [1] : vector<16x16xf32> to vector<16xf32>
    %30 = vector.shape_cast %29 : vector<16xf32> to vector<16x1xf32>
    %31 = vector.broadcast %30 : vector<16x1xf32> to vector<16x16xf32>
    %32 = arith.subf %28, %31 : vector<16x16xf32>
    %33 = math.exp %32 : vector<16x16xf32>
    %cst_12 = arith.constant dense<0.000000e+00> : vector<16xf32>
    %34 = vector.multi_reduction <add>, %33, %cst_12 [1] : vector<16x16xf32> to vector<16xf32>
    %35 = vector.shape_cast %34 : vector<16xf32> to vector<16x1xf32>
    %36 = tpu.reciprocal %35 {approx = true} : vector<16x1xf32> -> vector<16x1xf32>
    %37 = vector.broadcast %36 : vector<16x1xf32> to vector<16x16xf32>
    %38 = arith.mulf %33, %37 : vector<16x16xf32>
    %cst_13 = arith.constant dense<0.000000e+00> : vector<16x4xf32>
    %39 = tpu.matmul %38, %27, %cst_13 {dimension_numbers = #tpu.dot_dimension_numbers<[1], [0], [0], [1], [0, 0, 1, 1], [], []>} : vector<16x16xf32>, vector<16x4xf32>, vector<16x4xf32> -> vector<16x4xf32>
    %40 = vector.extract_strided_slice %7 {offsets = [0, 8], sizes = [16, 4], strides = [1, 1]} : vector<32x32xf32> to vector<16x4xf32>
    %41 = vector.extract_strided_slice %8 {offsets = [0, 8], sizes = [16, 4], strides = [1, 1]} : vector<32x32xf32> to vector<16x4xf32>
    %42 = vector.extract_strided_slice %9 {offsets = [0, 8], sizes = [16, 4], strides = [1, 1]} : vector<32x32xf32> to vector<16x4xf32>
    %cst_14 = arith.constant dense<0.000000e+00> : vector<16x16xf32>
    %43 = tpu.matmul %40, %41, %cst_14 {dimension_numbers = #tpu.dot_dimension_numbers<[1], [1], [0], [0], [0, 0, 1, 0], [], []>} : vector<16x4xf32>, vector<16x4xf32>, vector<16x16xf32> -> vector<16x16xf32>
    %cst_15 = arith.constant dense<0xFF800000> : vector<16xf32>
    %44 = vector.multi_reduction <maximumf>, %43, %cst_15 [1] : vector<16x16xf32> to vector<16xf32>
    %45 = vector.shape_cast %44 : vector<16xf32> to vector<16x1xf32>
    %46 = vector.broadcast %45 : vector<16x1xf32> to vector<16x16xf32>
    %47 = arith.subf %43, %46 : vector<16x16xf32>
    %48 = math.exp %47 : vector<16x16xf32>
    %cst_16 = arith.constant dense<0.000000e+00> : vector<16xf32>
    %49 = vector.multi_reduction <add>, %48, %cst_16 [1] : vector<16x16xf32> to vector<16xf32>
    %50 = vector.shape_cast %49 : vector<16xf32> to vector<16x1xf32>
    %51 = tpu.reciprocal %50 {approx = true} : vector<16x1xf32> -> vector<16x1xf32>
    %52 = vector.broadcast %51 : vector<16x1xf32> to vector<16x16xf32>
    %53 = arith.mulf %48, %52 : vector<16x16xf32>
    %cst_17 = arith.constant dense<0.000000e+00> : vector<16x4xf32>
    %54 = tpu.matmul %53, %42, %cst_17 {dimension_numbers = #tpu.dot_dimension_numbers<[1], [0], [0], [1], [0, 0, 1, 1], [], []>} : vector<16x16xf32>, vector<16x4xf32>, vector<16x4xf32> -> vector<16x4xf32>
    %55 = vector.extract_strided_slice %7 {offsets = [0, 12], sizes = [16, 4], strides = [1, 1]} : vector<32x32xf32> to vector<16x4xf32>
    %56 = vector.extract_strided_slice %8 {offsets = [0, 12], sizes = [16, 4], strides = [1, 1]} : vector<32x32xf32> to vector<16x4xf32>
    %57 = vector.extract_strided_slice %9 {offsets = [0, 12], sizes = [16, 4], strides = [1, 1]} : vector<32x32xf32> to vector<16x4xf32>
    %cst_18 = arith.constant dense<0.000000e+00> : vector<16x16xf32>
    %58 = tpu.matmul %55, %56, %cst_18 {dimension_numbers = #tpu.dot_dimension_numbers<[1], [1], [0], [0], [0, 0, 1, 0], [], []>} : vector<16x4xf32>, vector<16x4xf32>, vector<16x16xf32> -> vector<16x16xf32>
    %cst_19 = arith.constant dense<0xFF800000> : vector<16xf32>
    %59 = vector.multi_reduction <maximumf>, %58, %cst_19 [1] : vector<16x16xf32> to vector<16xf32>
    %60 = vector.shape_cast %59 : vector<16xf32> to vector<16x1xf32>
    %61 = vector.broadcast %60 : vector<16x1xf32> to vector<16x16xf32>
    %62 = arith.subf %58, %61 : vector<16x16xf32>
    %63 = math.exp %62 : vector<16x16xf32>
    %cst_20 = arith.constant dense<0.000000e+00> : vector<16xf32>
    %64 = vector.multi_reduction <add>, %63, %cst_20 [1] : vector<16x16xf32> to vector<16xf32>
    %65 = vector.shape_cast %64 : vector<16xf32> to vector<16x1xf32>
    %66 = tpu.reciprocal %65 {approx = true} : vector<16x1xf32> -> vector<16x1xf32>
    %67 = vector.broadcast %66 : vector<16x1xf32> to vector<16x16xf32>
    %68 = arith.mulf %63, %67 : vector<16x16xf32>
    %cst_21 = arith.constant dense<0.000000e+00> : vector<16x4xf32>
    %69 = tpu.matmul %68, %57, %cst_21 {dimension_numbers = #tpu.dot_dimension_numbers<[1], [0], [0], [1], [0, 0, 1, 1], [], []>} : vector<16x16xf32>, vector<16x4xf32>, vector<16x4xf32> -> vector<16x4xf32>
    %70 = vector.extract_strided_slice %7 {offsets = [0, 16], sizes = [16, 4], strides = [1, 1]} : vector<32x32xf32> to vector<16x4xf32>
    %71 = vector.extract_strided_slice %8 {offsets = [0, 16], sizes = [16, 4], strides = [1, 1]} : vector<32x32xf32> to vector<16x4xf32>
    %72 = vector.extract_strided_slice %9 {offsets = [0, 16], sizes = [16, 4], strides = [1, 1]} : vector<32x32xf32> to vector<16x4xf32>
    %cst_22 = arith.constant dense<0.000000e+00> : vector<16x16xf32>
    %73 = tpu.matmul %70, %71, %cst_22 {dimension_numbers = #tpu.dot_dimension_numbers<[1], [1], [0], [0], [0, 0, 1, 0], [], []>} : vector<16x4xf32>, vector<16x4xf32>, vector<16x16xf32> -> vector<16x16xf32>
    %cst_23 = arith.constant dense<0xFF800000> : vector<16xf32>
    %74 = vector.multi_reduction <maximumf>, %73, %cst_23 [1] : vector<16x16xf32> to vector<16xf32>
    %75 = vector.shape_cast %74 : vector<16xf32> to vector<16x1xf32>
    %76 = vector.broadcast %75 : vector<16x1xf32> to vector<16x16xf32>
    %77 = arith.subf %73, %76 : vector<16x16xf32>
    %78 = math.exp %77 : vector<16x16xf32>
    %cst_24 = arith.constant dense<0.000000e+00> : vector<16xf32>
    %79 = vector.multi_reduction <add>, %78, %cst_24 [1] : vector<16x16xf32> to vector<16xf32>
    %80 = vector.shape_cast %79 : vector<16xf32> to vector<16x1xf32>
    %81 = tpu.reciprocal %80 {approx = true} : vector<16x1xf32> -> vector<16x1xf32>
    %82 = vector.broadcast %81 : vector<16x1xf32> to vector<16x16xf32>
    %83 = arith.mulf %78, %82 : vector<16x16xf32>
    %cst_25 = arith.constant dense<0.000000e+00> : vector<16x4xf32>
    %84 = tpu.matmul %83, %72, %cst_25 {dimension_numbers = #tpu.dot_dimension_numbers<[1], [0], [0], [1], [0, 0, 1, 1], [], []>} : vector<16x16xf32>, vector<16x4xf32>, vector<16x4xf32> -> vector<16x4xf32>
    %85 = vector.extract_strided_slice %7 {offsets = [0, 20], sizes = [16, 4], strides = [1, 1]} : vector<32x32xf32> to vector<16x4xf32>
    %86 = vector.extract_strided_slice %8 {offsets = [0, 20], sizes = [16, 4], strides = [1, 1]} : vector<32x32xf32> to vector<16x4xf32>
    %87 = vector.extract_strided_slice %9 {offsets = [0, 20], sizes = [16, 4], strides = [1, 1]} : vector<32x32xf32> to vector<16x4xf32>
    %cst_26 = arith.constant dense<0.000000e+00> : vector<16x16xf32>
    %88 = tpu.matmul %85, %86, %cst_26 {dimension_numbers = #tpu.dot_dimension_numbers<[1], [1], [0], [0], [0, 0, 1, 0], [], []>} : vector<16x4xf32>, vector<16x4xf32>, vector<16x16xf32> -> vector<16x16xf32>
    %cst_27 = arith.constant dense<0xFF800000> : vector<16xf32>
    %89 = vector.multi_reduction <maximumf>, %88, %cst_27 [1] : vector<16x16xf32> to vector<16xf32>
    %90 = vector.shape_cast %89 : vector<16xf32> to vector<16x1xf32>
    %91 = vector.broadcast %90 : vector<16x1xf32> to vector<16x16xf32>
    %92 = arith.subf %88, %91 : vector<16x16xf32>
    %93 = math.exp %92 : vector<16x16xf32>
    %cst_28 = arith.constant dense<0.000000e+00> : vector<16xf32>
    %94 = vector.multi_reduction <add>, %93, %cst_28 [1] : vector<16x16xf32> to vector<16xf32>
    %95 = vector.shape_cast %94 : vector<16xf32> to vector<16x1xf32>
    %96 = tpu.reciprocal %95 {approx = true} : vector<16x1xf32> -> vector<16x1xf32>
    %97 = vector.broadcast %96 : vector<16x1xf32> to vector<16x16xf32>
    %98 = arith.mulf %93, %97 : vector<16x16xf32>
    %cst_29 = arith.constant dense<0.000000e+00> : vector<16x4xf32>
    %99 = tpu.matmul %98, %87, %cst_29 {dimension_numbers = #tpu.dot_dimension_numbers<[1], [0], [0], [1], [0, 0, 1, 1], [], []>} : vector<16x16xf32>, vector<16x4xf32>, vector<16x4xf32> -> vector<16x4xf32>
    %100 = vector.extract_strided_slice %7 {offsets = [0, 24], sizes = [16, 4], strides = [1, 1]} : vector<32x32xf32> to vector<16x4xf32>
    %101 = vector.extract_strided_slice %8 {offsets = [0, 24], sizes = [16, 4], strides = [1, 1]} : vector<32x32xf32> to vector<16x4xf32>
    %102 = vector.extract_strided_slice %9 {offsets = [0, 24], sizes = [16, 4], strides = [1, 1]} : vector<32x32xf32> to vector<16x4xf32>
    %cst_30 = arith.constant dense<0.000000e+00> : vector<16x16xf32>
    %103 = tpu.matmul %100, %101, %cst_30 {dimension_numbers = #tpu.dot_dimension_numbers<[1], [1], [0], [0], [0, 0, 1, 0], [], []>} : vector<16x4xf32>, vector<16x4xf32>, vector<16x16xf32> -> vector<16x16xf32>
    %cst_31 = arith.constant dense<0xFF800000> : vector<16xf32>
    %104 = vector.multi_reduction <maximumf>, %103, %cst_31 [1] : vector<16x16xf32> to vector<16xf32>
    %105 = vector.shape_cast %104 : vector<16xf32> to vector<16x1xf32>
    %106 = vector.broadcast %105 : vector<16x1xf32> to vector<16x16xf32>
    %107 = arith.subf %103, %106 : vector<16x16xf32>
    %108 = math.exp %107 : vector<16x16xf32>
    %cst_32 = arith.constant dense<0.000000e+00> : vector<16xf32>
    %109 = vector.multi_reduction <add>, %108, %cst_32 [1] : vector<16x16xf32> to vector<16xf32>
    %110 = vector.shape_cast %109 : vector<16xf32> to vector<16x1xf32>
    %111 = tpu.reciprocal %110 {approx = true} : vector<16x1xf32> -> vector<16x1xf32>
    %112 = vector.broadcast %111 : vector<16x1xf32> to vector<16x16xf32>
    %113 = arith.mulf %108, %112 : vector<16x16xf32>
    %cst_33 = arith.constant dense<0.000000e+00> : vector<16x4xf32>
    %114 = tpu.matmul %113, %102, %cst_33 {dimension_numbers = #tpu.dot_dimension_numbers<[1], [0], [0], [1], [0, 0, 1, 1], [], []>} : vector<16x16xf32>, vector<16x4xf32>, vector<16x4xf32> -> vector<16x4xf32>
    %115 = vector.extract_strided_slice %7 {offsets = [0, 28], sizes = [16, 4], strides = [1, 1]} : vector<32x32xf32> to vector<16x4xf32>
    %116 = vector.extract_strided_slice %8 {offsets = [0, 28], sizes = [16, 4], strides = [1, 1]} : vector<32x32xf32> to vector<16x4xf32>
    %117 = vector.extract_strided_slice %9 {offsets = [0, 28], sizes = [16, 4], strides = [1, 1]} : vector<32x32xf32> to vector<16x4xf32>
    %cst_34 = arith.constant dense<0.000000e+00> : vector<16x16xf32>
    %118 = tpu.matmul %115, %116, %cst_34 {dimension_numbers = #tpu.dot_dimension_numbers<[1], [1], [0], [0], [0, 0, 1, 0], [], []>} : vector<16x4xf32>, vector<16x4xf32>, vector<16x16xf32> -> vector<16x16xf32>
    %cst_35 = arith.constant dense<0xFF800000> : vector<16xf32>
    %119 = vector.multi_reduction <maximumf>, %118, %cst_35 [1] : vector<16x16xf32> to vector<16xf32>
    %120 = vector.shape_cast %119 : vector<16xf32> to vector<16x1xf32>
    %121 = vector.broadcast %120 : vector<16x1xf32> to vector<16x16xf32>
    %122 = arith.subf %118, %121 : vector<16x16xf32>
    %123 = math.exp %122 : vector<16x16xf32>
    %cst_36 = arith.constant dense<0.000000e+00> : vector<16xf32>
    %124 = vector.multi_reduction <add>, %123, %cst_36 [1] : vector<16x16xf32> to vector<16xf32>
    %125 = vector.shape_cast %124 : vector<16xf32> to vector<16x1xf32>
    %126 = tpu.reciprocal %125 {approx = true} : vector<16x1xf32> -> vector<16x1xf32>
    %127 = vector.broadcast %126 : vector<16x1xf32> to vector<16x16xf32>
    %128 = arith.mulf %123, %127 : vector<16x16xf32>
    %cst_37 = arith.constant dense<0.000000e+00> : vector<16x4xf32>
    %129 = tpu.matmul %128, %117, %cst_37 {dimension_numbers = #tpu.dot_dimension_numbers<[1], [0], [0], [1], [0, 0, 1, 1], [], []>} : vector<16x16xf32>, vector<16x4xf32>, vector<16x4xf32> -> vector<16x4xf32>
    %130 = tpu.concatenate %24, %39, %54, %69, %84, %99, %114, %129 in 1 : vector<16x4xf32>, vector<16x4xf32>, vector<16x4xf32>, vector<16x4xf32>, vector<16x4xf32>, vector<16x4xf32>, vector<16x4xf32>, vector<16x4xf32> -> vector<16x32xf32>
    %131 = vector.extract_strided_slice %7 {offsets = [16, 0], sizes = [16, 4], strides = [1, 1]} : vector<32x32xf32> to vector<16x4xf32>
    %132 = vector.extract_strided_slice %8 {offsets = [16, 0], sizes = [16, 4], strides = [1, 1]} : vector<32x32xf32> to vector<16x4xf32>
    %133 = vector.extract_strided_slice %9 {offsets = [16, 0], sizes = [16, 4], strides = [1, 1]} : vector<32x32xf32> to vector<16x4xf32>
    %cst_38 = arith.constant dense<0.000000e+00> : vector<16x16xf32>
    %134 = tpu.matmul %131, %132, %cst_38 {dimension_numbers = #tpu.dot_dimension_numbers<[1], [1], [0], [0], [0, 0, 1, 0], [], []>} : vector<16x4xf32>, vector<16x4xf32>, vector<16x16xf32> -> vector<16x16xf32>
    %cst_39 = arith.constant dense<0xFF800000> : vector<16xf32>
    %135 = vector.multi_reduction <maximumf>, %134, %cst_39 [1] : vector<16x16xf32> to vector<16xf32>
    %136 = vector.shape_cast %135 : vector<16xf32> to vector<16x1xf32>
    %137 = vector.broadcast %136 : vector<16x1xf32> to vector<16x16xf32>
    %138 = arith.subf %134, %137 : vector<16x16xf32>
    %139 = math.exp %138 : vector<16x16xf32>
    %cst_40 = arith.constant dense<0.000000e+00> : vector<16xf32>
    %140 = vector.multi_reduction <add>, %139, %cst_40 [1] : vector<16x16xf32> to vector<16xf32>
    %141 = vector.shape_cast %140 : vector<16xf32> to vector<16x1xf32>
    %142 = tpu.reciprocal %141 {approx = true} : vector<16x1xf32> -> vector<16x1xf32>
    %143 = vector.broadcast %142 : vector<16x1xf32> to vector<16x16xf32>
    %144 = arith.mulf %139, %143 : vector<16x16xf32>
    %cst_41 = arith.constant dense<0.000000e+00> : vector<16x4xf32>
    %145 = tpu.matmul %144, %133, %cst_41 {dimension_numbers = #tpu.dot_dimension_numbers<[1], [0], [0], [1], [0, 0, 1, 1], [], []>} : vector<16x16xf32>, vector<16x4xf32>, vector<16x4xf32> -> vector<16x4xf32>
    %146 = vector.extract_strided_slice %7 {offsets = [16, 4], sizes = [16, 4], strides = [1, 1]} : vector<32x32xf32> to vector<16x4xf32>
    %147 = vector.extract_strided_slice %8 {offsets = [16, 4], sizes = [16, 4], strides = [1, 1]} : vector<32x32xf32> to vector<16x4xf32>
    %148 = vector.extract_strided_slice %9 {offsets = [16, 4], sizes = [16, 4], strides = [1, 1]} : vector<32x32xf32> to vector<16x4xf32>
    %cst_42 = arith.constant dense<0.000000e+00> : vector<16x16xf32>
    %149 = tpu.matmul %146, %147, %cst_42 {dimension_numbers = #tpu.dot_dimension_numbers<[1], [1], [0], [0], [0, 0, 1, 0], [], []>} : vector<16x4xf32>, vector<16x4xf32>, vector<16x16xf32> -> vector<16x16xf32>
    %cst_43 = arith.constant dense<0xFF800000> : vector<16xf32>
    %150 = vector.multi_reduction <maximumf>, %149, %cst_43 [1] : vector<16x16xf32> to vector<16xf32>
    %151 = vector.shape_cast %150 : vector<16xf32> to vector<16x1xf32>
    %152 = vector.broadcast %151 : vector<16x1xf32> to vector<16x16xf32>
    %153 = arith.subf %149, %152 : vector<16x16xf32>
    %154 = math.exp %153 : vector<16x16xf32>
    %cst_44 = arith.constant dense<0.000000e+00> : vector<16xf32>
    %155 = vector.multi_reduction <add>, %154, %cst_44 [1] : vector<16x16xf32> to vector<16xf32>
    %156 = vector.shape_cast %155 : vector<16xf32> to vector<16x1xf32>
    %157 = tpu.reciprocal %156 {approx = true} : vector<16x1xf32> -> vector<16x1xf32>
    %158 = vector.broadcast %157 : vector<16x1xf32> to vector<16x16xf32>
    %159 = arith.mulf %154, %158 : vector<16x16xf32>
    %cst_45 = arith.constant dense<0.000000e+00> : vector<16x4xf32>
    %160 = tpu.matmul %159, %148, %cst_45 {dimension_numbers = #tpu.dot_dimension_numbers<[1], [0], [0], [1], [0, 0, 1, 1], [], []>} : vector<16x16xf32>, vector<16x4xf32>, vector<16x4xf32> -> vector<16x4xf32>
    %161 = vector.extract_strided_slice %7 {offsets = [16, 8], sizes = [16, 4], strides = [1, 1]} : vector<32x32xf32> to vector<16x4xf32>
    %162 = vector.extract_strided_slice %8 {offsets = [16, 8], sizes = [16, 4], strides = [1, 1]} : vector<32x32xf32> to vector<16x4xf32>
    %163 = vector.extract_strided_slice %9 {offsets = [16, 8], sizes = [16, 4], strides = [1, 1]} : vector<32x32xf32> to vector<16x4xf32>
    %cst_46 = arith.constant dense<0.000000e+00> : vector<16x16xf32>
    %164 = tpu.matmul %161, %162, %cst_46 {dimension_numbers = #tpu.dot_dimension_numbers<[1], [1], [0], [0], [0, 0, 1, 0], [], []>} : vector<16x4xf32>, vector<16x4xf32>, vector<16x16xf32> -> vector<16x16xf32>
    %cst_47 = arith.constant dense<0xFF800000> : vector<16xf32>
    %165 = vector.multi_reduction <maximumf>, %164, %cst_47 [1] : vector<16x16xf32> to vector<16xf32>
    %166 = vector.shape_cast %165 : vector<16xf32> to vector<16x1xf32>
    %167 = vector.broadcast %166 : vector<16x1xf32> to vector<16x16xf32>
    %168 = arith.subf %164, %167 : vector<16x16xf32>
    %169 = math.exp %168 : vector<16x16xf32>
    %cst_48 = arith.constant dense<0.000000e+00> : vector<16xf32>
    %170 = vector.multi_reduction <add>, %169, %cst_48 [1] : vector<16x16xf32> to vector<16xf32>
    %171 = vector.shape_cast %170 : vector<16xf32> to vector<16x1xf32>
    %172 = tpu.reciprocal %171 {approx = true} : vector<16x1xf32> -> vector<16x1xf32>
    %173 = vector.broadcast %172 : vector<16x1xf32> to vector<16x16xf32>
    %174 = arith.mulf %169, %173 : vector<16x16xf32>
    %cst_49 = arith.constant dense<0.000000e+00> : vector<16x4xf32>
    %175 = tpu.matmul %174, %163, %cst_49 {dimension_numbers = #tpu.dot_dimension_numbers<[1], [0], [0], [1], [0, 0, 1, 1], [], []>} : vector<16x16xf32>, vector<16x4xf32>, vector<16x4xf32> -> vector<16x4xf32>
    %176 = vector.extract_strided_slice %7 {offsets = [16, 12], sizes = [16, 4], strides = [1, 1]} : vector<32x32xf32> to vector<16x4xf32>
    %177 = vector.extract_strided_slice %8 {offsets = [16, 12], sizes = [16, 4], strides = [1, 1]} : vector<32x32xf32> to vector<16x4xf32>
    %178 = vector.extract_strided_slice %9 {offsets = [16, 12], sizes = [16, 4], strides = [1, 1]} : vector<32x32xf32> to vector<16x4xf32>
    %cst_50 = arith.constant dense<0.000000e+00> : vector<16x16xf32>
    %179 = tpu.matmul %176, %177, %cst_50 {dimension_numbers = #tpu.dot_dimension_numbers<[1], [1], [0], [0], [0, 0, 1, 0], [], []>} : vector<16x4xf32>, vector<16x4xf32>, vector<16x16xf32> -> vector<16x16xf32>
    %cst_51 = arith.constant dense<0xFF800000> : vector<16xf32>
    %180 = vector.multi_reduction <maximumf>, %179, %cst_51 [1] : vector<16x16xf32> to vector<16xf32>
    %181 = vector.shape_cast %180 : vector<16xf32> to vector<16x1xf32>
    %182 = vector.broadcast %181 : vector<16x1xf32> to vector<16x16xf32>
    %183 = arith.subf %179, %182 : vector<16x16xf32>
    %184 = math.exp %183 : vector<16x16xf32>
    %cst_52 = arith.constant dense<0.000000e+00> : vector<16xf32>
    %185 = vector.multi_reduction <add>, %184, %cst_52 [1] : vector<16x16xf32> to vector<16xf32>
    %186 = vector.shape_cast %185 : vector<16xf32> to vector<16x1xf32>
    %187 = tpu.reciprocal %186 {approx = true} : vector<16x1xf32> -> vector<16x1xf32>
    %188 = vector.broadcast %187 : vector<16x1xf32> to vector<16x16xf32>
    %189 = arith.mulf %184, %188 : vector<16x16xf32>
    %cst_53 = arith.constant dense<0.000000e+00> : vector<16x4xf32>
    %190 = tpu.matmul %189, %178, %cst_53 {dimension_numbers = #tpu.dot_dimension_numbers<[1], [0], [0], [1], [0, 0, 1, 1], [], []>} : vector<16x16xf32>, vector<16x4xf32>, vector<16x4xf32> -> vector<16x4xf32>
    %191 = vector.extract_strided_slice %7 {offsets = [16, 16], sizes = [16, 4], strides = [1, 1]} : vector<32x32xf32> to vector<16x4xf32>
    %192 = vector.extract_strided_slice %8 {offsets = [16, 16], sizes = [16, 4], strides = [1, 1]} : vector<32x32xf32> to vector<16x4xf32>
    %193 = vector.extract_strided_slice %9 {offsets = [16, 16], sizes = [16, 4], strides = [1, 1]} : vector<32x32xf32> to vector<16x4xf32>
    %cst_54 = arith.constant dense<0.000000e+00> : vector<16x16xf32>
    %194 = tpu.matmul %191, %192, %cst_54 {dimension_numbers = #tpu.dot_dimension_numbers<[1], [1], [0], [0], [0, 0, 1, 0], [], []>} : vector<16x4xf32>, vector<16x4xf32>, vector<16x16xf32> -> vector<16x16xf32>
    %cst_55 = arith.constant dense<0xFF800000> : vector<16xf32>
    %195 = vector.multi_reduction <maximumf>, %194, %cst_55 [1] : vector<16x16xf32> to vector<16xf32>
    %196 = vector.shape_cast %195 : vector<16xf32> to vector<16x1xf32>
    %197 = vector.broadcast %196 : vector<16x1xf32> to vector<16x16xf32>
    %198 = arith.subf %194, %197 : vector<16x16xf32>
    %199 = math.exp %198 : vector<16x16xf32>
    %cst_56 = arith.constant dense<0.000000e+00> : vector<16xf32>
    %200 = vector.multi_reduction <add>, %199, %cst_56 [1] : vector<16x16xf32> to vector<16xf32>
    %201 = vector.shape_cast %200 : vector<16xf32> to vector<16x1xf32>
    %202 = tpu.reciprocal %201 {approx = true} : vector<16x1xf32> -> vector<16x1xf32>
    %203 = vector.broadcast %202 : vector<16x1xf32> to vector<16x16xf32>
    %204 = arith.mulf %199, %203 : vector<16x16xf32>
    %cst_57 = arith.constant dense<0.000000e+00> : vector<16x4xf32>
    %205 = tpu.matmul %204, %193, %cst_57 {dimension_numbers = #tpu.dot_dimension_numbers<[1], [0], [0], [1], [0, 0, 1, 1], [], []>} : vector<16x16xf32>, vector<16x4xf32>, vector<16x4xf32> -> vector<16x4xf32>
    %206 = vector.extract_strided_slice %7 {offsets = [16, 20], sizes = [16, 4], strides = [1, 1]} : vector<32x32xf32> to vector<16x4xf32>
    %207 = vector.extract_strided_slice %8 {offsets = [16, 20], sizes = [16, 4], strides = [1, 1]} : vector<32x32xf32> to vector<16x4xf32>
    %208 = vector.extract_strided_slice %9 {offsets = [16, 20], sizes = [16, 4], strides = [1, 1]} : vector<32x32xf32> to vector<16x4xf32>
    %cst_58 = arith.constant dense<0.000000e+00> : vector<16x16xf32>
    %209 = tpu.matmul %206, %207, %cst_58 {dimension_numbers = #tpu.dot_dimension_numbers<[1], [1], [0], [0], [0, 0, 1, 0], [], []>} : vector<16x4xf32>, vector<16x4xf32>, vector<16x16xf32> -> vector<16x16xf32>
    %cst_59 = arith.constant dense<0xFF800000> : vector<16xf32>
    %210 = vector.multi_reduction <maximumf>, %209, %cst_59 [1] : vector<16x16xf32> to vector<16xf32>
    %211 = vector.shape_cast %210 : vector<16xf32> to vector<16x1xf32>
    %212 = vector.broadcast %211 : vector<16x1xf32> to vector<16x16xf32>
    %213 = arith.subf %209, %212 : vector<16x16xf32>
    %214 = math.exp %213 : vector<16x16xf32>
    %cst_60 = arith.constant dense<0.000000e+00> : vector<16xf32>
    %215 = vector.multi_reduction <add>, %214, %cst_60 [1] : vector<16x16xf32> to vector<16xf32>
    %216 = vector.shape_cast %215 : vector<16xf32> to vector<16x1xf32>
    %217 = tpu.reciprocal %216 {approx = true} : vector<16x1xf32> -> vector<16x1xf32>
    %218 = vector.broadcast %217 : vector<16x1xf32> to vector<16x16xf32>
    %219 = arith.mulf %214, %218 : vector<16x16xf32>
    %cst_61 = arith.constant dense<0.000000e+00> : vector<16x4xf32>
    %220 = tpu.matmul %219, %208, %cst_61 {dimension_numbers = #tpu.dot_dimension_numbers<[1], [0], [0], [1], [0, 0, 1, 1], [], []>} : vector<16x16xf32>, vector<16x4xf32>, vector<16x4xf32> -> vector<16x4xf32>
    %221 = vector.extract_strided_slice %7 {offsets = [16, 24], sizes = [16, 4], strides = [1, 1]} : vector<32x32xf32> to vector<16x4xf32>
    %222 = vector.extract_strided_slice %8 {offsets = [16, 24], sizes = [16, 4], strides = [1, 1]} : vector<32x32xf32> to vector<16x4xf32>
    %223 = vector.extract_strided_slice %9 {offsets = [16, 24], sizes = [16, 4], strides = [1, 1]} : vector<32x32xf32> to vector<16x4xf32>
    %cst_62 = arith.constant dense<0.000000e+00> : vector<16x16xf32>
    %224 = tpu.matmul %221, %222, %cst_62 {dimension_numbers = #tpu.dot_dimension_numbers<[1], [1], [0], [0], [0, 0, 1, 0], [], []>} : vector<16x4xf32>, vector<16x4xf32>, vector<16x16xf32> -> vector<16x16xf32>
    %cst_63 = arith.constant dense<0xFF800000> : vector<16xf32>
    %225 = vector.multi_reduction <maximumf>, %224, %cst_63 [1] : vector<16x16xf32> to vector<16xf32>
    %226 = vector.shape_cast %225 : vector<16xf32> to vector<16x1xf32>
    %227 = vector.broadcast %226 : vector<16x1xf32> to vector<16x16xf32>
    %228 = arith.subf %224, %227 : vector<16x16xf32>
    %229 = math.exp %228 : vector<16x16xf32>
    %cst_64 = arith.constant dense<0.000000e+00> : vector<16xf32>
    %230 = vector.multi_reduction <add>, %229, %cst_64 [1] : vector<16x16xf32> to vector<16xf32>
    %231 = vector.shape_cast %230 : vector<16xf32> to vector<16x1xf32>
    %232 = tpu.reciprocal %231 {approx = true} : vector<16x1xf32> -> vector<16x1xf32>
    %233 = vector.broadcast %232 : vector<16x1xf32> to vector<16x16xf32>
    %234 = arith.mulf %229, %233 : vector<16x16xf32>
    %cst_65 = arith.constant dense<0.000000e+00> : vector<16x4xf32>
    %235 = tpu.matmul %234, %223, %cst_65 {dimension_numbers = #tpu.dot_dimension_numbers<[1], [0], [0], [1], [0, 0, 1, 1], [], []>} : vector<16x16xf32>, vector<16x4xf32>, vector<16x4xf32> -> vector<16x4xf32>
    %236 = vector.extract_strided_slice %7 {offsets = [16, 28], sizes = [16, 4], strides = [1, 1]} : vector<32x32xf32> to vector<16x4xf32>
    %237 = vector.extract_strided_slice %8 {offsets = [16, 28], sizes = [16, 4], strides = [1, 1]} : vector<32x32xf32> to vector<16x4xf32>
    %238 = vector.extract_strided_slice %9 {offsets = [16, 28], sizes = [16, 4], strides = [1, 1]} : vector<32x32xf32> to vector<16x4xf32>
    %cst_66 = arith.constant dense<0.000000e+00> : vector<16x16xf32>
    %239 = tpu.matmul %236, %237, %cst_66 {dimension_numbers = #tpu.dot_dimension_numbers<[1], [1], [0], [0], [0, 0, 1, 0], [], []>} : vector<16x4xf32>, vector<16x4xf32>, vector<16x16xf32> -> vector<16x16xf32>
    %cst_67 = arith.constant dense<0xFF800000> : vector<16xf32>
    %240 = vector.multi_reduction <maximumf>, %239, %cst_67 [1] : vector<16x16xf32> to vector<16xf32>
    %241 = vector.shape_cast %240 : vector<16xf32> to vector<16x1xf32>
    %242 = vector.broadcast %241 : vector<16x1xf32> to vector<16x16xf32>
    %243 = arith.subf %239, %242 : vector<16x16xf32>
    %244 = math.exp %243 : vector<16x16xf32>
    %cst_68 = arith.constant dense<0.000000e+00> : vector<16xf32>
    %245 = vector.multi_reduction <add>, %244, %cst_68 [1] : vector<16x16xf32> to vector<16xf32>
    %246 = vector.shape_cast %245 : vector<16xf32> to vector<16x1xf32>
    %247 = tpu.reciprocal %246 {approx = true} : vector<16x1xf32> -> vector<16x1xf32>
    %248 = vector.broadcast %247 : vector<16x1xf32> to vector<16x16xf32>
    %249 = arith.mulf %244, %248 : vector<16x16xf32>
    %cst_69 = arith.constant dense<0.000000e+00> : vector<16x4xf32>
    %250 = tpu.matmul %249, %238, %cst_69 {dimension_numbers = #tpu.dot_dimension_numbers<[1], [0], [0], [1], [0, 0, 1, 1], [], []>} : vector<16x16xf32>, vector<16x4xf32>, vector<16x4xf32> -> vector<16x4xf32>
    %251 = tpu.concatenate %145, %160, %175, %190, %205, %220, %235, %250 in 1 : vector<16x4xf32>, vector<16x4xf32>, vector<16x4xf32>, vector<16x4xf32>, vector<16x4xf32>, vector<16x4xf32>, vector<16x4xf32>, vector<16x4xf32> -> vector<16x32xf32>
    %252 = tpu.concatenate %130, %251 in 0 : vector<16x32xf32>, vector<16x32xf32> -> vector<32x32xf32>
    %c0_70 = arith.constant 0 : index
    %c0_71 = arith.constant 0 : index
    %253 = vector.load %arg4[%c0_70, %c0_71] : memref<32x32xf32, #tpu.memory_space<vmem>>, vector<32x32xf32>
    %cst_72 = arith.constant dense<0.000000e+00> : vector<32x32xf32>
    %254 = tpu.matmul %252, %253, %cst_72 {dimension_numbers = #tpu.dot_dimension_numbers<[1], [1], [0], [0], [0, 0, 1, 0], [], []>} : vector<32x32xf32>, vector<32x32xf32>, vector<32x32xf32> -> vector<32x32xf32>
    %c0_73 = arith.constant 0 : index
    %c0_74 = arith.constant 0 : index
    %255 = vector.load %arg5[%c0_73, %c0_74] : memref<1x32xf32, #tpu.memory_space<vmem>>, vector<1x32xf32>
    %256 = vector.broadcast %255 : vector<1x32xf32> to vector<32x32xf32>
    %257 = arith.addf %254, %256 : vector<32x32xf32>
    %c0_75 = arith.constant 0 : index
    %c0_76 = arith.constant 0 : index
    %258 = vector.load %arg6[%c0_75, %c0_76] : memref<32x32xf32, #tpu.memory_space<vmem>>, vector<32x32xf32>
    tpu.vector_store %arg6[%c0_75, %c0_76], %257 {strides = array<i32>} : memref<32x32xf32, #tpu.memory_space<vmem>>, vector<32x32xf32>,
    return
  }
  func.func @transform_0(%arg0: i32) -> (i32, i32) {
    %c0_i32 = arith.constant 0 : i32
    %c0_i32_0 = arith.constant 0 : i32
    %c0_i32_1 = arith.constant 0 : i32
    return %c0_i32, %c0_i32_0 : i32, i32
  }
  func.func @transform_1(%arg0: i32) -> (i32, i32) {
    %c0_i32 = arith.constant 0 : i32
    %c0_i32_0 = arith.constant 0 : i32
    %c0_i32_1 = arith.constant 0 : i32
    return %c0_i32, %c0_i32_0 : i32, i32
  }
  func.func @transform_2(%arg0: i32) -> (i32, i32) {
    %c0_i32 = arith.constant 0 : i32
    %c0_i32_0 = arith.constant 0 : i32
    %c0_i32_1 = arith.constant 0 : i32
    return %c0_i32, %c0_i32_0 : i32, i32
  }
  func.func @transform_3(%arg0: i32) -> (i32, i32) {
    %c0_i32 = arith.constant 0 : i32
    %c0_i32_0 = arith.constant 0 : i32
    %c0_i32_1 = arith.constant 0 : i32
    return %c0_i32, %c0_i32_0 : i32, i32
  }
  func.func @transform_4(%arg0: i32) -> (i32, i32) {
    %c0_i32 = arith.constant 0 : i32
    %c0_i32_0 = arith.constant 0 : i32
    %c0_i32_1 = arith.constant 0 : i32
    return %c0_i32, %c0_i32_0 : i32, i32
  }
  func.func @transform_5(%arg0: i32) -> (i32, i32) {
    %c0_i32 = arith.constant 0 : i32
    %c0_i32_0 = arith.constant 0 : i32
    %c0_i32_1 = arith.constant 0 : i32
    return %c0_i32, %c0_i32_0 : i32, i32
  }
}

</mosaic_0001>

<bundles_post_ra>
// kernel: attention_forward.1
= control target key start
LH: loop header
LB: loop body
LE: loop exit
PB: predicated region body
PF: predicated region fallthrough
CT: control target
= control target key end

     0   :  { %vm41_vm0 = vcmask 261120   ;;  %s5469_s0 = inlined_call_operand.vmem [shape: f32[32,32], index: 0, kind: input, shape index: {}]   ;;  %s5470_s1 = inlined_call_operand.vmem [shape: f32[32,32], index: 1, kind: input, shape index: {}]   ;;  %s5471_s2 = inlined_call_operand.vmem [shape: f32[96,32], index: 2, kind: input, shape index: {}]   ;;  %s5472_s3 = inlined_call_operand.vmem [shape: f32[32,32], index: 3, kind: input, shape index: {}]   ;;  %s5473_s4 = inlined_call_operand.vmem [shape: f32[1,32], index: 4, kind: input, shape index: {}]   ;;  %s5474_s5 = inlined_call_operand.hbm [shape: f32[32,32], index: 5, kind: output, shape index: {}]  }
   0x1   :  { %v29_v0 = vld [vmem:[%s5471_s2] sm:$0xff]  ;;  %v30_v1 = vld [vmem:[%s5471_s2 + $0x8] sm:$0xff]  ;;  %v31_v2 = vld [vmem:[%s5471_s2 + $0x10] sm:$0xff] }
   0x2   :  { %v4253_v3 = vpack.c.bf16 %v30_v1, %v29_v0  ;;  %vm4878_vm1 = vmpackc.low %vm41_vm0, %vm41_vm0  ;;  %v32_v5 = vld [vmem:[%s5471_s2 + $0x18] sm:$0xff]  ;;  %v21_v7 = vld [vmem:[%s5469_s0] sm:$0xff] }
   0x3   :  { %v4259_v6 = vpack.c.bf16 %v32_v5, %v31_v2  ;;  %4003 = vmatprep.mubr.msk.f32.mxu0 %vm41_vm0, %v21_v7  ;;  %v33_v8 = vld [vmem:[%s5471_s2 + $0x20] sm:$0xff]  ;;  %v34_v9 = vld [vmem:[%s5471_s2 + $0x28] sm:$0xff] }
   0x4   :  { %4255 = vmatprep.subr.msk.bf16.mxu0 %vm4878_vm1, %v4253_v3 }
   0x5   :  { %4258 = vmatpush3.bf16.xpose.msk.msra.mxu0 %vm4878_vm1, %v4253_v3 }
   0x6   :  { %4261 = vmatprep.subr.msk.bf16.mxu0 %vm4878_vm1, %v4259_v6 }
   0x7   :  { %10 = vsyncpa [#allocation3], 0  ;;  %v4265_v10 = vpack.c.bf16 %v34_v9, %v33_v8  ;;  %v35_v11 = vld [vmem:[%s5471_s2 + $0x30] sm:$0xff]  ;;  %v36_v12 = vld [vmem:[%s5471_s2 + $0x38] sm:$0xff]  ;;  %vm217_vm2 = vcmask 31744   ;;  %vm303_vm4 = vcmask 130048  }
   0x8   :  { %v4271_v13 = vpack.c.bf16 %v36_v12, %v35_v11  ;;  %v37_v14 = vld [vmem:[%s5471_s2 + $0x40] sm:$0xff]  ;;  %v38_v15 = vld [vmem:[%s5471_s2 + $0x48] sm:$0xff]  ;;  %v39_v17 = vld [vmem:[%s5471_s2 + $0x50] sm:$0xff]  ;;  %s4806_s28 = smov 64   ;;  %s4807_s29 = smov 92   ;;  %vm1871_vm5 = vcmask 64512  }
   0x9   :  { %v4277_v16 = vpack.c.bf16 %v38_v15, %v37_v14  ;;  %v40_v18 = vld [vmem:[%s5471_s2 + $0x58] sm:$0xff]  ;;  %v22_v20 = vld [vmem:[%s5469_s0 + $0x8] sm:$0xff]  ;;  %v23_v21 = vld [vmem:[%s5469_s0 + $0x10] sm:$0xff]  ;;  %s4808_s30 = smov 124   ;;  %s4809_s6 = smov 60   ;;  %vm1874_vm6 = vcmask 97280  }
   0xa   :  { %v4283_v19 = vpack.c.bf16 %v40_v18, %v39_v17  ;;  %v24_v22 = vld [vmem:[%s5469_s0 + $0x18] sm:$0xff]  ;;  %v25_v23 = vld [vmem:[%s5470_s1] sm:$0xff]  ;;  %v26_v24 = vld [vmem:[%s5470_s1 + $0x8] sm:$0xff]  ;;  %s4805_s0 = smov 96   ;;  %s4810_s7 = smov 88   ;;  %vm1879_vm7 = vcmask 162816  }
   0xb   :  { %vm4971_vm3 = vmpackc.low %vm217_vm2, %vm217_vm2  ;;  %s4811_s8 = smov 120   ;;  %s4812_s9 = smov 84   ;;  %vm1882_vm8 = vcmask 195584   ;;  %vm1885_vm9 = vcmask 228352  }
   0xc   :  { %s4813_s10 = smov 116   ;;  %s4814_s11 = smov 56  }
   0xd   :  { %4264 = vmatpush3.bf16.xpose.msk.msra.mxu0 %vm4878_vm1, %v4259_v6  ;;  %s4815_s12 = smov 80   ;;  %s4816_s13 = smov 112  }
   0xe   :  { %4267 = vmatprep.subr.msk.bf16.mxu0 %vm4878_vm1, %v4265_v10  ;;  %s4817_s14 = smov 52   ;;  %s4818_s15 = smov 76  }
   0xf   :  { %s4819_s16 = smov 108   ;;  %s4820_s17 = smov 48  }
  0x10   :  { %s4821_s22 = smov 72   ;;  %s4822_s2 = smov 104  }
  0x11   :  { %s4824_s23 = smov 40   ;;  %s4825_s24 = smov 100  }
  0x12   :  { %s4826_s25 = smov 68   ;;  %s4827_s26 = smov 36  }
  0x13   :  { %s4828_s27 = smov 4  }
  0x15   :  { %4270 = vmatpush3.bf16.xpose.msk.msra.mxu0 %vm4878_vm1, %v4265_v10 }
  0x16   :  { %4273 = vmatprep.subr.msk.bf16.mxu0 %vm4878_vm1, %v4271_v13 }
  0x1d   :  { %4276 = vmatpush3.bf16.xpose.msk.msra.mxu0 %vm4878_vm1, %v4271_v13 }
  0x1e   :  { %4279 = vmatprep.subr.msk.bf16.mxu0 %vm4878_vm1, %v4277_v16 }
  0x25   :  { %4282 = vmatpush3.bf16.xpose.msk.msra.mxu0 %vm4878_vm1, %v4277_v16 }
  0x26   :  { %4285 = vmatprep.subr.msk.bf16.mxu0 %vm4878_vm1, %v4283_v19 }
  0x2d   :  { %4288 = vmatpush3.bf16.xpose.msk.msra.mxu0 %vm4878_vm1, %v4283_v19 }
  0x34   :  { %4004 = vmatmul.mubr.msk.f32.vlgmr.msra.gmra.mrb[0].mxu0 %vm41_vm0, %v22_v20 }
  0x35   :  { %4006 = vmatprep.mubr.msk.f32.mxu0 %vm41_vm0, %v23_v21 }
  0x38   :  { %4007 = vmatmul.mubr.msk.f32.gmra.mrb[2].mxu0 %vm41_vm0, %v24_v22 }
  0x39   :  { %4009 = vmatprep.mubr.msk.f32.mxu0 %vm41_vm0, %v25_v23 }
  0x3c   :  { %4010 = vmatmul.mubr.msk.f32.gmra.mrb[4].mxu0 %vm41_vm0, %v26_v24 }
 0x107   :  { %v4005_v25 = vpop.f32.mrb[0].mxu0 }
 0x108   :  { %v168_v26 = vpop.f32.mrb[1].mxu0  ;;  %v4979_v38 = vmul.f32 0.5, %v4005_v25 }
 0x109   :  { %v4957_v27 = vmul.f32 0.5, %v168_v26 }
 0x10b   :  { %v4959_v28 = vpop.f32.mrb[2].mxu0  ;;  %4019 = vmatprep.mubr.msk.f32.mxu1 %vm217_vm2, %v4957_v27 }
 0x10c   :  { %v4963_v29 = vpop.f32.mrb[3].mxu0 }
 0x10f   :  { %v4011_v30 = vpop.f32.mrb[4].mxu0 }
 0x110   :  { %v188_v31 = vpop.f32.mrb[5].mxu0 }
 0x111   :  { %v4965_v32 = vpack.i.bf16 %v4011_v30, %v188_v31 }
 0x113   :  { %4494 = vrot.lane.b32.xlu0 %v4965_v32, %s4805_s0 }
 0x185   :  { %v4495_v33 = vpop.permute.xlu0 %4494 }
 0x186   :  { %v4497_v34 = vunpack.i.h.bf16 %v4495_v33  ;;  %v4496_v35 = vunpack.i.l.bf16 %v4495_v33 }
 0x188   :  { %v4289_v37 = vpack.c.bf16 %v4497_v34, %v4496_v35 }
 0x18a   :  { %4291 = vmatprep.subr.msk.bf16.mxu1 %vm4971_vm3, %v4289_v37 }
 0x18b   :  { %4294 = vmatpush3.bf16.xpose.msk.msra.mxu1 %vm4971_vm3, %v4289_v37 }
 0x192   :  { %4020 = vmatmul.mubr.msk.f32.vlgmr.msra.gmra.mrb[0].mxu1 %vm217_vm2, %v4979_v38 }
 0x265   :  { %v4021_v39 = vpop.f32.mrb[0].mxu1 }
 0x266   :  { %v294_v40 = vpop.f32.mrb[1].mxu1  ;;  %v307_v41 = vsel %vm303_vm4, %v4021_v39, -inf }
 0x267   :  { %308 = vmax.xlane.f32.xlu1 %v307_v41  ;;  %v304_v42 = vsel %vm303_vm4, %v294_v40, -inf }
 0x268   :  { %305 = vmax.xlane.f32.xlu0 %v304_v42 }
 0x278   :  { %4499 = vrot.lane.b32.xlu1 %v4965_v32, %s4806_s28 }
 0x27c   :  { %4504 = vrot.lane.b32.xlu1 %v4965_v32, %s4807_s29 }
 0x27e   :  { %415 = vrot.lane.b32.xlu0 %v4979_v38, %s4808_s30 }
 0x2f4   :  { %v309_v43 = vpop.xlane.xlu1 %308 }
 0x2f5   :  { %v311_v44 = vsub.f32 %v4021_v39, %v309_v43  ;;  %v306_v45 = vpop.xlane.xlu0 %305 }
 0x2f6   :  { %v310_v46 = vsub.f32 %v294_v40, %v306_v45 }
 0x2f7   :  { %v314_v47 = vmul.f32 1.442695, %v311_v44 }
 0x2f8   :  { %v312_v48 = vmul.f32 1.442695, %v310_v46  ;;  %v4500_v49 = vpop.permute.xlu1 %4499 }
 0x2f9   :  { %4653 = vpow2.f32 %v314_v47  ;;  %v4502_v50 = vunpack.i.h.bf16 %v4500_v49  ;;  %v4501_v51 = vunpack.i.l.bf16 %v4500_v49  ;;  %v416_v5 = vpop.permute.xlu0 %415 }
 0x2fa   :  { %4655 = vpow2.f32 %v312_v48 }
 0x2fb   :  { %v4295_v52 = vpack.c.bf16 %v4502_v50, %v4501_v51 }
 0x2fc   :  { %v4505_v53 = vpop.permute.xlu1 %4504 }
 0x2fd   :  { %v4507_v54 = vunpack.i.h.bf16 %v4505_v53  ;;  %v4506_v55 = vunpack.i.l.bf16 %v4505_v53  ;;  %4296 = vmatprep.subr.bf16.mxu1 %v4295_v52 }
 0x2fe   :  { %4298 = vmatpush3.bf16.msra.mxu1 %v4295_v52 }
 0x2ff   :  { %v4299_v56 = vpack.c.bf16 %v4507_v54, %v4506_v55 }
 0x301   :  { %4301 = vmatprep.subr.msk.bf16.mxu1 %vm4971_vm3, %v4299_v56 }
 0x303   :  { %v4654_v57 = vpop.eup %4653 }
 0x304   :  { %v319_v58 = vsel %vm303_vm4, %v4654_v57, 0.0  ;;  %v4656_v59 = vpop.eup %4655 }
 0x305   :  { %320 = vadd.xlane.f32.xlu1 %v319_v58  ;;  %v316_v60 = vsel %vm303_vm4, %v4656_v59, 0.0 }
 0x309   :  { %317 = vadd.xlane.f32.xlu1 %v316_v60 }
 0x31a   :  { %413 = vrot.lane.b32.xlu1 %v4957_v27, %s4808_s30 }
 0x392   :  { %v321_v61 = vpop.xlane.xlu1 %320 }
 0x393   :  { %4657 = vrcp.f32 %v321_v61 }
 0x396   :  { %v318_v62 = vpop.xlane.xlu1 %317 }
 0x397   :  { %4659 = vrcp.f32 %v318_v62 }
 0x39a   :  { %v414_v3 = vpop.permute.xlu1 %413 }
 0x39d   :  { %v4658_v63 = vpop.eup %4657 }
 0x39e   :  { %v325_v2 = vmul.f32 %v4658_v63, %v4654_v57 }
 0x3a1   :  { %v4660_v0 = vpop.eup %4659 }
 0x3a2   :  { %v324_v1 = vmul.f32 %v4660_v0, %v4656_v59 }
 0x3a4   :  { %4026 = vmatprep.mubr.msk.f32.mxu1 %vm303_vm4, %v324_v1 }
 0x3a5   :  { %4027 = vmatmul.mubr.msk.f32.vlgmr.msra.gmra.mrb[2].mxu1 %vm303_vm4, %v325_v2 }
 0x3a6   :  { %4304 = vmatpush3.bf16.xpose.msk.msra.mxu1 %vm4971_vm3, %v4299_v56  ;;  %4033 = vmatprep.mubr.msk.f32.mxu1 %vm217_vm2, %v414_v3 }
 0x3ad   :  { %4034 = vmatmul.mubr.msk.f32.vlgmr.msra.gmra.mrb[4].mxu1 %vm217_vm2, %v416_v5 }
 0x478   :  { %v5003_v6 = vpop.f32.mrb[2].mxu1 }
 0x479   :  { %v5005_v7 = vpop.f32.mrb[3].mxu1 }
 0x480   :  { %v4035_v8 = vpop.f32.mrb[4].mxu1 }
 0x481   :  { %v495_v9 = vpop.f32.mrb[5].mxu1  ;;  %v507_v10 = vsel %vm303_vm4, %v4035_v8, -inf }
 0x482   :  { %508 = vmax.xlane.f32.xlu0 %v507_v10  ;;  %v504_v11 = vsel %vm303_vm4, %v495_v9, -inf }
 0x483   :  { %505 = vmax.xlane.f32.xlu1 %v504_v11 }
 0x494   :  { %4509 = vrot.lane.b32.xlu1 %v4965_v32, %s4809_s6 }
 0x498   :  { %4514 = vrot.lane.b32.xlu0 %v4965_v32, %s4810_s7  ;;  %613 = vrot.lane.b32.xlu1 %v4957_v27, %s4811_s8 }
 0x50f   :  { %v509_v12 = vpop.xlane.xlu0 %508 }
 0x510   :  { %v511_v13 = vsub.f32 %v4035_v8, %v509_v12  ;;  %v506_v14 = vpop.xlane.xlu1 %505 }
 0x511   :  { %v510_v15 = vsub.f32 %v495_v9, %v506_v14 }
 0x512   :  { %v514_v16 = vmul.f32 1.442695, %v511_v13 }
 0x513   :  { %v512_v17 = vmul.f32 1.442695, %v510_v15  ;;  %v4515_v18 = vpop.permute.xlu0 %4514 }
 0x514   :  { %4661 = vpow2.f32 %v514_v16  ;;  %v4510_v19 = vpop.permute.xlu1 %4509  ;;  %v4517_v20 = vunpack.i.h.bf16 %v4515_v18  ;;  %v4516_v21 = vunpack.i.l.bf16 %v4515_v18 }
 0x515   :  { %v4512_v22 = vunpack.i.h.bf16 %v4510_v19  ;;  %v4511_v23 = vunpack.i.l.bf16 %v4510_v19  ;;  %4663 = vpow2.f32 %v512_v17 }
 0x516   :  { %v4309_v25 = vpack.c.bf16 %v4517_v20, %v4516_v21 }
 0x517   :  { %v4305_v24 = vpack.c.bf16 %v4512_v22, %v4511_v23 }
 0x518   :  { %v614_v34 = vpop.permute.xlu1 %613 }
 0x519   :  { %4306 = vmatprep.subr.bf16.mxu1 %v4305_v24 }
 0x51a   :  { %4308 = vmatpush3.bf16.msra.mxu1 %v4305_v24 }
 0x51b   :  { %4311 = vmatprep.subr.msk.bf16.mxu1 %vm4971_vm3, %v4309_v25 }
 0x51e   :  { %v4662_v26 = vpop.eup %4661 }
 0x51f   :  { %v519_v30 = vsel %vm303_vm4, %v4662_v26, 0.0  ;;  %v4664_v31 = vpop.eup %4663 }
 0x520   :  { %520 = vadd.xlane.f32.xlu1 %v519_v30  ;;  %v516_v33 = vsel %vm303_vm4, %v4664_v31, 0.0 }
 0x524   :  { %517 = vadd.xlane.f32.xlu1 %v516_v33 }
 0x535   :  { %615 = vrot.lane.b32.xlu1 %v4979_v38, %s4811_s8 }
 0x5ad   :  { %v521_v35 = vpop.xlane.xlu1 %520 }
 0x5ae   :  { %4665 = vrcp.f32 %v521_v35 }
 0x5b1   :  { %v518_v37 = vpop.xlane.xlu1 %517 }
 0x5b2   :  { %4667 = vrcp.f32 %v518_v37 }
 0x5b5   :  { %v616_v43 = vpop.permute.xlu1 %615 }
 0x5b8   :  { %v4666_v39 = vpop.eup %4665 }
 0x5b9   :  { %v525_v42 = vmul.f32 %v4666_v39, %v4662_v26 }
 0x5bc   :  { %v4668_v40 = vpop.eup %4667 }
 0x5bd   :  { %v524_v41 = vmul.f32 %v4668_v40, %v4664_v31 }
 0x5bf   :  { %4040 = vmatprep.mubr.msk.f32.mxu1 %vm303_vm4, %v524_v41 }
 0x5c0   :  { %4041 = vmatmul.mubr.msk.f32.vlgmr.msra.gmra.mrb[6].mxu1 %vm303_vm4, %v525_v42 }
 0x5c1   :  { %4314 = vmatpush3.bf16.xpose.msk.msra.mxu1 %vm4971_vm3, %v4309_v25  ;;  %4047 = vmatprep.mubr.msk.f32.mxu1 %vm217_vm2, %v614_v34 }
 0x5c8   :  { %4048 = vmatmul.mubr.msk.f32.vlgmr.msra.gmra.mrb[8].mxu1 %vm217_vm2, %v616_v43 }
 0x693   :  { %v5027_v44 = vpop.f32.mrb[6].mxu1 }
 0x694   :  { %v5029_v45 = vpop.f32.mrb[7].mxu1 }
 0x69b   :  { %v4049_v46 = vpop.f32.mrb[8].mxu1 }
 0x69c   :  { %v695_v47 = vpop.f32.mrb[9].mxu1  ;;  %v707_v48 = vsel %vm303_vm4, %v4049_v46, -inf }
 0x69d   :  { %708 = vmax.xlane.f32.xlu0 %v707_v48  ;;  %v704_v49 = vsel %vm303_vm4, %v695_v47, -inf }
 0x69e   :  { %705 = vmax.xlane.f32.xlu1 %v704_v49 }
 0x72a   :  { %v709_v50 = vpop.xlane.xlu0 %708 }
 0x72b   :  { %v711_v51 = vsub.f32 %v4049_v46, %v709_v50  ;;  %v706_v52 = vpop.xlane.xlu1 %705 }
 0x72c   :  { %v710_v53 = vsub.f32 %v695_v47, %v706_v52 }
 0x72d   :  { %v714_v54 = vmul.f32 1.442695, %v711_v51 }
 0x72e   :  { %v712_v55 = vmul.f32 1.442695, %v710_v53 }
 0x72f   :  { %4669 = vpow2.f32 %v714_v54 }
 0x730   :  { %4671 = vpow2.f32 %v712_v55 }
 0x739   :  { %v4670_v56 = vpop.eup %4669 }
 0x73a   :  { %v4672_v57 = vpop.eup %4671  ;;  %v719_v58 = vsel %vm303_vm4, %v4670_v56, 0.0 }
 0x73b   :  { %720 = vadd.xlane.f32.xlu1 %v719_v58  ;;  %v716_v59 = vsel %vm303_vm4, %v4672_v57, 0.0 }
 0x73c   :  { %717 = vadd.xlane.f32.xlu0 %v716_v59 }
 0x74c   :  { %4524 = vrot.lane.b32.xlu1 %v4965_v32, %s4812_s9 }
 0x750   :  { %813 = vrot.lane.b32.xlu1 %v4957_v27, %s4813_s10 }
 0x752   :  { %4519 = vrot.lane.b32.xlu0 %v4965_v32, %s4814_s11 }
 0x756   :  { %815 = vrot.lane.b32.xlu0 %v4979_v38, %s4813_s10 }
 0x7c8   :  { %v721_v60 = vpop.xlane.xlu1 %720 }
 0x7c9   :  { %4673 = vrcp.f32 %v721_v60  ;;  %v718_v61 = vpop.xlane.xlu0 %717 }
 0x7ca   :  { %4675 = vrcp.f32 %v718_v61 }
 0x7cc   :  { %v4525_v62 = vpop.permute.xlu1 %4524 }
 0x7cd   :  { %v4520_v63 = vpop.permute.xlu0 %4519  ;;  %v4527_v0 = vunpack.i.h.bf16 %v4525_v62  ;;  %v4526_v1 = vunpack.i.l.bf16 %v4525_v62 }
 0x7ce   :  { %v4522_v2 = vunpack.i.h.bf16 %v4520_v63  ;;  %v4521_v3 = vunpack.i.l.bf16 %v4520_v63 }
 0x7cf   :  { %v4319_v8 = vpack.c.bf16 %v4527_v0, %v4526_v1 }
 0x7d0   :  { %v4315_v5 = vpack.c.bf16 %v4522_v2, %v4521_v3  ;;  %v814_v13 = vpop.permute.xlu1 %813 }
 0x7d1   :  { %v816_v14 = vpop.permute.xlu0 %815 }
 0x7d2   :  { %4316 = vmatprep.subr.bf16.mxu1 %v4315_v5 }
 0x7d3   :  { %v4674_v9 = vpop.eup %4673  ;;  %4318 = vmatpush3.bf16.msra.mxu1 %v4315_v5 }
 0x7d4   :  { %v4676_v10 = vpop.eup %4675  ;;  %4321 = vmatprep.subr.msk.bf16.mxu1 %vm4971_vm3, %v4319_v8  ;;  %v725_v12 = vmul.f32 %v4674_v9, %v4670_v56 }
 0x7d5   :  { %v724_v11 = vmul.f32 %v4676_v10, %v4672_v57  ;;  %v27_v10 = vld [vmem:[%s5470_s1 + $0x10] sm:$0xff] }
 0x7d6   :  { %4012 = vmatprep.mubr.msk.f32.mxu0 %vm41_vm0, %v27_v10 }
 0x7d7   :  { %4054 = vmatprep.mubr.msk.f32.mxu1 %vm303_vm4, %v724_v11  ;;  %v28_v11 = vld [vmem:[%s5470_s1 + $0x18] sm:$0xff]  ;;  %s4823_s1 = smov 44  }
 0x7d8   :  { %4055 = vmatmul.mubr.msk.f32.vlgmr.msra.gmra.mrb[10].mxu1 %vm303_vm4, %v725_v12  ;;  %4013 = vmatmul.mubr.msk.f32.gmra.mrb[6].mxu0 %vm41_vm0, %v28_v11 }
 0x7d9   :  { %4061 = vmatprep.mubr.msk.f32.mxu1 %vm217_vm2, %v814_v13 }
 0x7dc   :  { %4324 = vmatpush3.bf16.xpose.msk.msra.mxu1 %vm4971_vm3, %v4319_v8 }
 0x7e3   :  { %4062 = vmatmul.mubr.msk.f32.vlgmr.msra.gmra.mrb[12].mxu1 %vm217_vm2, %v816_v14 }
 0x8ab   :  { %v5051_v15 = vpop.f32.mrb[10].mxu1 }
 0x8ac   :  { %v5053_v16 = vpop.f32.mrb[11].mxu1 }
 0x8b6   :  { %v4063_v17 = vpop.f32.mrb[12].mxu1 }
 0x8b7   :  { %v895_v18 = vpop.f32.mrb[13].mxu1  ;;  %v907_v19 = vsel %vm303_vm4, %v4063_v17, -inf }
 0x8b8   :  { %908 = vmax.xlane.f32.xlu0 %v907_v19  ;;  %v904_v20 = vsel %vm303_vm4, %v895_v18, -inf }
 0x8b9   :  { %905 = vmax.xlane.f32.xlu1 %v904_v20 }
 0x945   :  { %v909_v21 = vpop.xlane.xlu0 %908 }
 0x946   :  { %v911_v22 = vsub.f32 %v4063_v17, %v909_v21  ;;  %v906_v23 = vpop.xlane.xlu1 %905 }
 0x947   :  { %v910_v24 = vsub.f32 %v895_v18, %v906_v23 }
 0x948   :  { %v914_v25 = vmul.f32 1.442695, %v911_v22 }
 0x949   :  { %v912_v26 = vmul.f32 1.442695, %v910_v24 }
 0x94a   :  { %4677 = vpow2.f32 %v914_v25 }
 0x94b   :  { %4679 = vpow2.f32 %v912_v26 }
 0x954   :  { %v4678_v30 = vpop.eup %4677 }
 0x955   :  { %v4680_v31 = vpop.eup %4679  ;;  %v919_v33 = vsel %vm303_vm4, %v4678_v30, 0.0 }
 0x956   :  { %920 = vadd.xlane.f32.xlu1 %v919_v33  ;;  %v916_v34 = vsel %vm303_vm4, %v4680_v31, 0.0 }
 0x957   :  { %917 = vadd.xlane.f32.xlu0 %v916_v34 }
 0x967   :  { %4534 = vrot.lane.b32.xlu1 %v4965_v32, %s4815_s12 }
 0x96b   :  { %1013 = vrot.lane.b32.xlu1 %v4957_v27, %s4816_s13 }
 0x96d   :  { %4529 = vrot.lane.b32.xlu0 %v4965_v32, %s4817_s14 }
 0x971   :  { %1015 = vrot.lane.b32.xlu0 %v4979_v38, %s4816_s13 }
 0x9e3   :  { %v921_v35 = vpop.xlane.xlu1 %920 }
 0x9e4   :  { %4681 = vrcp.f32 %v921_v35  ;;  %v918_v37 = vpop.xlane.xlu0 %917 }
 0x9e5   :  { %4683 = vrcp.f32 %v918_v37 }
 0x9e7   :  { %v4535_v39 = vpop.permute.xlu1 %4534 }
 0x9e8   :  { %v4530_v40 = vpop.permute.xlu0 %4529  ;;  %v4537_v41 = vunpack.i.h.bf16 %v4535_v39  ;;  %v4536_v42 = vunpack.i.l.bf16 %v4535_v39 }
 0x9e9   :  { %v4532_v43 = vunpack.i.h.bf16 %v4530_v40  ;;  %v4531_v46 = vunpack.i.l.bf16 %v4530_v40 }
 0x9ea   :  { %v4329_v48 = vpack.c.bf16 %v4537_v41, %v4536_v42  ;;  %v4014_v42 = vpop.f32.mrb[6].mxu0 }
 0x9eb   :  { %v4325_v47 = vpack.c.bf16 %v4532_v43, %v4531_v46  ;;  %v1014_v53 = vpop.permute.xlu1 %1013  ;;  %v198_v43 = vpop.f32.mrb[7].mxu0 }
 0x9ec   :  { %v1016_v54 = vpop.permute.xlu0 %1015  ;;  %v5119_v46 = vpack.i.bf16 %v4014_v42, %v198_v43 }
 0x9ed   :  { %4326 = vmatprep.subr.bf16.mxu1 %v4325_v47 }
 0x9ee   :  { %v4682_v49 = vpop.eup %4681  ;;  %4328 = vmatpush3.bf16.msra.mxu1 %v4325_v47 }
 0x9ef   :  { %v4684_v50 = vpop.eup %4683  ;;  %4331 = vmatprep.subr.msk.bf16.mxu1 %vm4971_vm3, %v4329_v48  ;;  %v925_v52 = vmul.f32 %v4682_v49, %v4678_v30 }
 0x9f0   :  { %v924_v51 = vmul.f32 %v4684_v50, %v4680_v31 }
 0x9f2   :  { %4068 = vmatprep.mubr.msk.f32.mxu1 %vm303_vm4, %v924_v51 }
 0x9f3   :  { %4069 = vmatmul.mubr.msk.f32.vlgmr.msra.gmra.mrb[14].mxu1 %vm303_vm4, %v925_v52 }
 0x9f4   :  { %4075 = vmatprep.mubr.msk.f32.mxu1 %vm217_vm2, %v1014_v53 }
 0x9f7   :  { %4334 = vmatpush3.bf16.xpose.msk.msra.mxu1 %vm4971_vm3, %v4329_v48 }
 0x9fe   :  { %4076 = vmatmul.mubr.msk.f32.vlgmr.msra.gmra.mrb[16].mxu1 %vm217_vm2, %v1016_v54 }
 0xac6   :  { %v5075_v55 = vpop.f32.mrb[14].mxu1 }
 0xac7   :  { %v5077_v56 = vpop.f32.mrb[15].mxu1 }
 0xad1   :  { %v4077_v57 = vpop.f32.mrb[16].mxu1 }
 0xad2   :  { %v1095_v58 = vpop.f32.mrb[17].mxu1  ;;  %v1107_v59 = vsel %vm303_vm4, %v4077_v57, -inf }
 0xad3   :  { %1108 = vmax.xlane.f32.xlu0 %v1107_v59  ;;  %v1104_v60 = vsel %vm303_vm4, %v1095_v58, -inf }
 0xad4   :  { %1105 = vmax.xlane.f32.xlu1 %v1104_v60 }
 0xb60   :  { %v1109_v61 = vpop.xlane.xlu0 %1108 }
 0xb61   :  { %v1111_v62 = vsub.f32 %v4077_v57, %v1109_v61  ;;  %v1106_v63 = vpop.xlane.xlu1 %1105 }
 0xb62   :  { %v1110_v0 = vsub.f32 %v1095_v58, %v1106_v63 }
 0xb63   :  { %v1114_v1 = vmul.f32 1.442695, %v1111_v62 }
 0xb64   :  { %v1112_v2 = vmul.f32 1.442695, %v1110_v0 }
 0xb65   :  { %4685 = vpow2.f32 %v1114_v1 }
 0xb66   :  { %4687 = vpow2.f32 %v1112_v2 }
 0xb6f   :  { %v4686_v3 = vpop.eup %4685 }
 0xb70   :  { %v4688_v5 = vpop.eup %4687  ;;  %v1119_v8 = vsel %vm303_vm4, %v4686_v3, 0.0 }
 0xb71   :  { %1120 = vadd.xlane.f32.xlu1 %v1119_v8  ;;  %v1116_v9 = vsel %vm303_vm4, %v4688_v5, 0.0 }
 0xb72   :  { %1117 = vadd.xlane.f32.xlu0 %v1116_v9 }
 0xb82   :  { %4544 = vrot.lane.b32.xlu1 %v4965_v32, %s4818_s15 }
 0xb86   :  { %1213 = vrot.lane.b32.xlu1 %v4957_v27, %s4819_s16 }
 0xb88   :  { %4539 = vrot.lane.b32.xlu0 %v4965_v32, %s4820_s17 }
 0xb8a   :  { %1215 = vrot.lane.b32.xlu1 %v4979_v38, %s4819_s16 }
 0xb8c   :  { %4549 = vrot.lane.b32.xlu0 %v4965_v32, %s4821_s22 }
 0xb8e   :  { %1415 = vrot.lane.b32.xlu1 %v4979_v38, %s4822_s2 }
 0xb90   :  { %1413 = vrot.lane.b32.xlu0 %v4957_v27, %s4822_s2 }
 0xbfe   :  { %v1121_v12 = vpop.xlane.xlu1 %1120 }
 0xbff   :  { %4689 = vrcp.f32 %v1121_v12  ;;  %v1118_v13 = vpop.xlane.xlu0 %1117 }
 0xc00   :  { %4691 = vrcp.f32 %v1118_v13 }
 0xc02   :  { %v4545_v14 = vpop.permute.xlu1 %4544 }
 0xc03   :  { %v4540_v17 = vpop.permute.xlu0 %4539  ;;  %v4547_v18 = vunpack.i.h.bf16 %v4545_v14  ;;  %v4546_v19 = vunpack.i.l.bf16 %v4545_v14 }
 0xc04   :  { %v4542_v20 = vunpack.i.h.bf16 %v4540_v17  ;;  %v4541_v21 = vunpack.i.l.bf16 %v4540_v17 }
 0xc05   :  { %v4339_v25 = vpack.c.bf16 %v4547_v18, %v4546_v19 }
 0xc06   :  { %v4335_v22 = vpack.c.bf16 %v4542_v20, %v4541_v21  ;;  %v1214_v23 = vpop.permute.xlu1 %1213 }
 0xc07   :  { %v4550_v24 = vpop.permute.xlu0 %4549 }
 0xc08   :  { %v4552_v26 = vunpack.i.h.bf16 %v4550_v24  ;;  %v4551_v30 = vunpack.i.l.bf16 %v4550_v24  ;;  %4336 = vmatprep.subr.bf16.mxu1 %v4335_v22 }
 0xc09   :  { %v4690_v31 = vpop.eup %4689  ;;  %4338 = vmatpush3.bf16.msra.mxu1 %v4335_v22 }
 0xc0a   :  { %v4692_v33 = vpop.eup %4691  ;;  %v4349_v34 = vpack.c.bf16 %v4552_v26, %v4551_v30  ;;  %4341 = vmatprep.subr.msk.bf16.mxu1 %vm4971_vm3, %v4339_v25  ;;  %v1125_v39 = vmul.f32 %v4690_v31, %v4686_v3  ;;  %v1216_v40 = vpop.permute.xlu1 %1215 }
 0xc0b   :  { %v1414_v35 = vpop.permute.xlu0 %1413  ;;  %v1124_v37 = vmul.f32 %v4692_v33, %v4688_v5 }
 0xc0c   :  { %4351 = vmatprep.subr.msk.bf16.mxu0 %vm4971_vm3, %v4349_v34  ;;  %4103 = vmatprep.mubr.msk.f32.mxu0 %vm217_vm2, %v1414_v35 }
 0xc0d   :  { %4082 = vmatprep.mubr.msk.f32.mxu1 %vm303_vm4, %v1124_v37  ;;  %4354 = vmatpush3.bf16.xpose.msk.msra.mxu0 %vm4971_vm3, %v4349_v34 }
 0xc0e   :  { %4083 = vmatmul.mubr.msk.f32.vlgmr.msra.gmra.mrb[18].mxu1 %vm303_vm4, %v1125_v39  ;;  %v1416_v41 = vpop.permute.xlu1 %1415 }
 0xc0f   :  { %4089 = vmatprep.mubr.msk.f32.mxu1 %vm217_vm2, %v1214_v23 }
 0xc12   :  { %4344 = vmatpush3.bf16.xpose.msk.msra.mxu1 %vm4971_vm3, %v4339_v25 }
 0xc14   :  { %4104 = vmatmul.mubr.msk.f32.vlgmr.msra.gmra.mrb[8].mxu0 %vm217_vm2, %v1416_v41 }
 0xc19   :  { %4090 = vmatmul.mubr.msk.f32.vlgmr.msra.gmra.mrb[20].mxu1 %vm217_vm2, %v1216_v40 }
 0xce1   :  { %v5121_v47 = vpop.f32.mrb[18].mxu1 }
 0xce2   :  { %v5123_v48 = vpop.f32.mrb[19].mxu1 }
 0xce7   :  { %v4105_v49 = vpop.f32.mrb[8].mxu0 }
 0xce8   :  { %v1495_v50 = vpop.f32.mrb[9].mxu0  ;;  %v1507_v58 = vsel %vm303_vm4, %v4105_v49, -inf }
 0xce9   :  { %v1504_v57 = vsel %vm303_vm4, %v1495_v50, -inf }
 0xcec   :  { %v4091_v51 = vpop.f32.mrb[20].mxu1 }
 0xced   :  { %v1295_v52 = vpop.f32.mrb[21].mxu1  ;;  %v1307_v53 = vsel %vm303_vm4, %v4091_v51, -inf }
 0xcee   :  { %1308 = vmax.xlane.f32.xlu1 %v1307_v53  ;;  %v1304_v54 = vsel %vm303_vm4, %v1295_v52, -inf }
 0xcef   :  { %1305 = vmax.xlane.f32.xlu0 %v1304_v54 }
 0xcf3   :  { %1505 = vmax.xlane.f32.xlu0 %v1504_v57 }
 0xcf7   :  { %1508 = vmax.xlane.f32.xlu0 %v1507_v58 }
 0xd7b   :  { %v1309_v60 = vpop.xlane.xlu1 %1308 }
 0xd7c   :  { %v1306_v59 = vpop.xlane.xlu0 %1305  ;;  %v1311_v63 = vsub.f32 %v4091_v51, %v1309_v60 }
 0xd7d   :  { %v1310_v14 = vsub.f32 %v1295_v52, %v1306_v59 }
 0xd7e   :  { %v1314_v3 = vmul.f32 1.442695, %v1311_v63 }
 0xd7f   :  { %v1312_v17 = vmul.f32 1.442695, %v1310_v14 }
 0xd80   :  { %v1506_v61 = vpop.xlane.xlu0 %1505 }
 0xd81   :  { %v1510_v62 = vsub.f32 %v1495_v50, %v1506_v61 }
 0xd83   :  { %v1512_v0 = vmul.f32 1.442695, %v1510_v62 }
 0xd84   :  { %v1509_v1 = vpop.xlane.xlu0 %1508 }
 0xd85   :  { %4693 = vpow2.f32 %v1512_v0  ;;  %v1511_v2 = vsub.f32 %v4105_v49, %v1509_v1 }
 0xd87   :  { %v1514_v5 = vmul.f32 1.442695, %v1511_v2 }
 0xd89   :  { %4695 = vpow2.f32 %v1514_v5 }
 0xd8a   :  { %4697 = vpow2.f32 %v1314_v3 }
 0xd8b   :  { %4699 = vpow2.f32 %v1312_v17 }
 0xd8f   :  { %v4694_v8 = vpop.eup %4693 }
 0xd90   :  { %v1516_v9 = vsel %vm303_vm4, %v4694_v8, 0.0 }
 0xd91   :  { %1517 = vadd.xlane.f32.xlu1 %v1516_v9 }
 0xd93   :  { %v4696_v10 = vpop.eup %4695 }
 0xd94   :  { %v1519_v11 = vsel %vm303_vm4, %v4696_v10, 0.0  ;;  %v4698_v12 = vpop.eup %4697 }
 0xd95   :  { %1520 = vadd.xlane.f32.xlu0 %v1519_v11  ;;  %v1319_v13 = vsel %vm303_vm4, %v4698_v12, 0.0  ;;  %v4700_v18 = vpop.eup %4699 }
 0xd96   :  { %v1316_v19 = vsel %vm303_vm4, %v4700_v18, 0.0 }
 0xd99   :  { %1320 = vadd.xlane.f32.xlu0 %v1319_v13 }
 0xda2   :  { %4554 = vrot.lane.b32.xlu1 %v4965_v32, %s4823_s1 }
 0xdaf   :  { %4559 = vrot.lane.b32.xlu0 %v4965_v32, %s4824_s23 }
 0xdb3   :  { %1615 = vrot.lane.b32.xlu0 %v4979_v38, %s4825_s24 }
 0xdc6   :  { %1317 = vadd.xlane.f32.xlu1 %v1316_v19 }
 0xdd7   :  { %4564 = vrot.lane.b32.xlu1 %v4965_v32, %s4826_s25 }
 0xddb   :  { %1613 = vrot.lane.b32.xlu1 %v4957_v27, %s4825_s24 }
 0xe1e   :  { %v1518_v20 = vpop.xlane.xlu1 %1517 }
 0xe1f   :  { %4701 = vrcp.f32 %v1518_v20 }
 0xe22   :  { %v4555_v21 = vpop.permute.xlu1 %4554  ;;  %v1521_v22 = vpop.xlane.xlu0 %1520 }
 0xe23   :  { %v4557_v23 = vunpack.i.h.bf16 %v4555_v21  ;;  %v4556_v24 = vunpack.i.l.bf16 %v4555_v21 }
 0xe25   :  { %v4345_v25 = vpack.c.bf16 %v4557_v23, %v4556_v24 }
 0xe26   :  { %v1321_v38 = vpop.xlane.xlu0 %1320 }
 0xe27   :  { %4346 = vmatprep.subr.bf16.mxu1 %v4345_v25  ;;  %4703 = vrcp.f32 %v1321_v38 }
 0xe28   :  { %4348 = vmatpush3.bf16.msra.mxu1 %v4345_v25 }
 0xe29   :  { %v4702_v35 = vpop.eup %4701 }
 0xe2a   :  { %v4560_v26 = vpop.permute.xlu0 %4559  ;;  %v1524_v50 = vmul.f32 %v4702_v35, %v4694_v8 }
 0xe2b   :  { %v4562_v30 = vunpack.i.h.bf16 %v4560_v26  ;;  %v4561_v31 = vunpack.i.l.bf16 %v4560_v26 }
 0xe2d   :  { %v4355_v33 = vpack.c.bf16 %v4562_v30, %v4561_v31  ;;  %v5172_v31 = vmul.f32 0.5, %v4963_v29 }
 0xe2e   :  { %v1616_v54 = vpop.permute.xlu0 %1615 }
 0xe2f   :  { %4356 = vmatprep.subr.bf16.mxu1 %v4355_v33 }
 0xe31   :  { %v4704_v37 = vpop.eup %4703 }
 0xe32   :  { %v1325_v43 = vmul.f32 %v4704_v37, %v4698_v12 }
 0xe53   :  { %v1318_v34 = vpop.xlane.xlu1 %1317 }
 0xe54   :  { %4705 = vrcp.f32 %v1318_v34 }
 0xe55   :  { %4707 = vrcp.f32 %v1521_v22 }
 0xe57   :  { %v4565_v27 = vpop.permute.xlu1 %4564 }
 0xe58   :  { %v4567_v40 = vunpack.i.h.bf16 %v4565_v27  ;;  %v4566_v41 = vunpack.i.l.bf16 %v4565_v27 }
 0xe5a   :  { %v4359_v51 = vpack.c.bf16 %v4567_v40, %v4566_v41 }
 0xe5b   :  { %v1614_v53 = vpop.permute.xlu1 %1613 }
 0xe5e   :  { %v4706_v39 = vpop.eup %4705 }
 0xe5f   :  { %v1324_v42 = vmul.f32 %v4706_v39, %v4700_v18  ;;  %v4708_v49 = vpop.eup %4707 }
 0xe60   :  { %v1525_v52 = vmul.f32 %v4708_v49, %v4696_v10 }
 0xe61   :  { %4096 = vmatprep.mubr.msk.f32.mxu1 %vm303_vm4, %v1324_v42 }
 0xe62   :  { %4097 = vmatmul.mubr.msk.f32.vlgmr.msra.gmra.mrb[22].mxu1 %vm303_vm4, %v1325_v43 }
 0xe63   :  { %4358 = vmatpush3.bf16.msra.mxu1 %v4355_v33  ;;  %4110 = vmatprep.mubr.msk.f32.mxu1 %vm303_vm4, %v1524_v50  ;;  %v5181_v33 = vmul.f32 0.5, %v4959_v28 }
 0xe64   :  { %4361 = vmatprep.subr.msk.bf16.mxu1 %vm4971_vm3, %v4359_v51 }
 0xe66   :  { %4111 = vmatmul.mubr.msk.f32.vlgmr.msra.gmra.mrb[24].mxu1 %vm303_vm4, %v1525_v52 }
 0xe67   :  { %4117 = vmatprep.mubr.msk.f32.mxu1 %vm217_vm2, %v1614_v53 }
 0xe6c   :  { %4364 = vmatpush3.bf16.xpose.msk.msra.mxu1 %vm4971_vm3, %v4359_v51 }
 0xe73   :  { %4118 = vmatmul.mubr.msk.f32.vlgmr.msra.gmra.mrb[26].mxu1 %vm217_vm2, %v1616_v54 }
 0xf35   :  { %v5153_v57 = vpop.f32.mrb[22].mxu1 }
 0xf36   :  { %v5155_v58 = vpop.f32.mrb[23].mxu1 }
 0xf39   :  { %v5157_v59 = vpop.f32.mrb[24].mxu1 }
 0xf3a   :  { %v5159_v60 = vpop.f32.mrb[25].mxu1 }
 0xf46   :  { %v4119_v61 = vpop.f32.mrb[26].mxu1 }
 0xf47   :  { %v1695_v62 = vpop.f32.mrb[27].mxu1  ;;  %v1707_v63 = vsel %vm303_vm4, %v4119_v61, -inf }
 0xf48   :  { %1708 = vmax.xlane.f32.xlu0 %v1707_v63  ;;  %v1704_v0 = vsel %vm303_vm4, %v1695_v62, -inf }
 0xf49   :  { %1705 = vmax.xlane.f32.xlu1 %v1704_v0 }
 0xfd5   :  { %v1709_v1 = vpop.xlane.xlu0 %1708 }
 0xfd6   :  { %v1711_v2 = vsub.f32 %v4119_v61, %v1709_v1  ;;  %v1706_v3 = vpop.xlane.xlu1 %1705 }
 0xfd7   :  { %v1710_v5 = vsub.f32 %v1695_v62, %v1706_v3 }
 0xfd8   :  { %v1714_v8 = vmul.f32 1.442695, %v1711_v2 }
 0xfd9   :  { %v1712_v9 = vmul.f32 1.442695, %v1710_v5 }
 0xfda   :  { %4709 = vpow2.f32 %v1714_v8 }
 0xfdb   :  { %4711 = vpow2.f32 %v1712_v9 }
 0xfe4   :  { %v4710_v10 = vpop.eup %4709 }
 0xfe5   :  { %v4712_v11 = vpop.eup %4711  ;;  %v1719_v12 = vsel %vm303_vm4, %v4710_v10, 0.0 }
 0xfe6   :  { %1720 = vadd.xlane.f32.xlu1 %v1719_v12  ;;  %v1716_v13 = vsel %vm303_vm4, %v4712_v11, 0.0 }
 0xfe7   :  { %1717 = vadd.xlane.f32.xlu0 %v1716_v13 }
 0xff7   :  { %4574 = vrot.lane.b32.xlu1 %v5119_v46, %s4805_s0  ;;  %s4829_s0 = smov 8  }
 0xffd   :  { %4569 = vrot.lane.b32.xlu0 %v4965_v32, %s4827_s26 }
0x1073   :  { %v1721_v14 = vpop.xlane.xlu1 %1720 }
0x1074   :  { %4713 = vrcp.f32 %v1721_v14  ;;  %v1718_v17 = vpop.xlane.xlu0 %1717 }
0x1075   :  { %4715 = vrcp.f32 %v1718_v17 }
0x1077   :  { %v4575_v18 = vpop.permute.xlu1 %4574 }
0x1078   :  { %v4570_v19 = vpop.permute.xlu0 %4569  ;;  %v4577_v20 = vunpack.i.h.bf16 %v4575_v18  ;;  %v4576_v21 = vunpack.i.l.bf16 %v4575_v18 }
0x1079   :  { %v4572_v22 = vunpack.i.h.bf16 %v4570_v19  ;;  %v4571_v23 = vunpack.i.l.bf16 %v4570_v19 }
0x107a   :  { %v4369_v25 = vpack.c.bf16 %v4577_v20, %v4576_v21 }
0x107b   :  { %v4365_v24 = vpack.c.bf16 %v4572_v22, %v4571_v23 }
0x107d   :  { %4366 = vmatprep.subr.bf16.mxu0 %v4365_v24 }
0x107e   :  { %v4714_v38 = vpop.eup %4713  ;;  %4368 = vmatpush3.bf16.msra.mxu0 %v4365_v24 }
0x107f   :  { %v4716_v26 = vpop.eup %4715  ;;  %4371 = vmatprep.subr.msk.bf16.mxu0 %vm4971_vm3, %v4369_v25  ;;  %v1725_v30 = vmul.f32 %v4714_v38, %v4710_v10 }
0x1080   :  { %v1724_v32 = vmul.f32 %v4716_v26, %v4712_v11 }
0x1082   :  { %4124 = vmatprep.mubr.msk.f32.mxu0 %vm303_vm4, %v1724_v32 }
0x1083   :  { %4125 = vmatmul.mubr.msk.f32.vlgmr.msra.gmra.mrb[10].mxu0 %vm303_vm4, %v1725_v30 }
0x1084   :  { %4131 = vmatprep.mubr.msk.f32.mxu0 %vm217_vm2, %v5172_v31 }
0x1087   :  { %4374 = vmatpush3.bf16.xpose.msk.msra.mxu0 %vm4971_vm3, %v4369_v25 }
0x108e   :  { %4132 = vmatmul.mubr.msk.f32.vlgmr.msra.gmra.mrb[12].mxu0 %vm217_vm2, %v5181_v33 }
0x1156   :  { %v5185_v34 = vpop.f32.mrb[10].mxu0 }
0x1157   :  { %v5187_v29 = vpop.f32.mrb[11].mxu0 }
0x1161   :  { %v4133_v27 = vpop.f32.mrb[12].mxu0 }
0x1162   :  { %v1970_v35 = vpop.f32.mrb[13].mxu0  ;;  %v1982_v37 = vsel %vm303_vm4, %v4133_v27, -inf }
0x1163   :  { %1983 = vmax.xlane.f32.xlu0 %v1982_v37  ;;  %v1979_v39 = vsel %vm303_vm4, %v1970_v35, -inf }
0x1164   :  { %1980 = vmax.xlane.f32.xlu1 %v1979_v39 }
0x11f0   :  { %v1984_v40 = vpop.xlane.xlu0 %1983 }
0x11f1   :  { %v1986_v41 = vsub.f32 %v4133_v27, %v1984_v40  ;;  %v1981_v42 = vpop.xlane.xlu1 %1980 }
0x11f2   :  { %v1985_v28 = vsub.f32 %v1970_v35, %v1981_v42 }
0x11f3   :  { %v1989_v43 = vmul.f32 1.442695, %v1986_v41 }
0x11f4   :  { %v1987_v49 = vmul.f32 1.442695, %v1985_v28 }
0x11f5   :  { %4717 = vpow2.f32 %v1989_v43 }
0x11f6   :  { %4719 = vpow2.f32 %v1987_v49 }
0x11ff   :  { %v4718_v50 = vpop.eup %4717 }
0x1200   :  { %v4720_v51 = vpop.eup %4719  ;;  %v1994_v52 = vsel %vm303_vm4, %v4718_v50, 0.0 }
0x1201   :  { %1995 = vadd.xlane.f32.xlu1 %v1994_v52  ;;  %v1991_v53 = vsel %vm303_vm4, %v4720_v51, 0.0 }
0x1202   :  { %1992 = vadd.xlane.f32.xlu0 %v1991_v53 }
0x1212   :  { %4584 = vrot.lane.b32.xlu1 %v5119_v46, %s4807_s29  ;;  %s4831_s29 = smov 16  }
0x1216   :  { %2088 = vrot.lane.b32.xlu1 %v5172_v31, %s4808_s30 }
0x1218   :  { %4579 = vrot.lane.b32.xlu0 %v5119_v46, %s4806_s28  ;;  %s4830_s28 = smov 12  }
0x121c   :  { %2090 = vrot.lane.b32.xlu0 %v5181_v33, %s4808_s30  ;;  %s4832_s30 = smov 20  }
0x128e   :  { %v1996_v54 = vpop.xlane.xlu1 %1995 }
0x128f   :  { %4721 = vrcp.f32 %v1996_v54  ;;  %v1993_v61 = vpop.xlane.xlu0 %1992 }
0x1290   :  { %4723 = vrcp.f32 %v1993_v61 }
0x1292   :  { %v4585_v62 = vpop.permute.xlu1 %4584 }
0x1293   :  { %v4580_v63 = vpop.permute.xlu0 %4579  ;;  %v4587_v0 = vunpack.i.h.bf16 %v4585_v62  ;;  %v4586_v1 = vunpack.i.l.bf16 %v4585_v62 }
0x1294   :  { %v4582_v2 = vunpack.i.h.bf16 %v4580_v63  ;;  %v4581_v3 = vunpack.i.l.bf16 %v4580_v63 }
0x1295   :  { %v4379_v8 = vpack.c.bf16 %v4587_v0, %v4586_v1 }
0x1296   :  { %v4375_v5 = vpack.c.bf16 %v4582_v2, %v4581_v3  ;;  %v2089_v13 = vpop.permute.xlu1 %2088 }
0x1297   :  { %v2091_v14 = vpop.permute.xlu0 %2090 }
0x1298   :  { %4376 = vmatprep.subr.bf16.mxu1 %v4375_v5 }
0x1299   :  { %v4722_v9 = vpop.eup %4721  ;;  %4378 = vmatpush3.bf16.msra.mxu1 %v4375_v5 }
0x129a   :  { %v4724_v10 = vpop.eup %4723  ;;  %4381 = vmatprep.subr.msk.bf16.mxu1 %vm4971_vm3, %v4379_v8  ;;  %v2000_v12 = vmul.f32 %v4722_v9, %v4718_v50 }
0x129b   :  { %v1999_v11 = vmul.f32 %v4724_v10, %v4720_v51 }
0x129d   :  { %4138 = vmatprep.mubr.msk.f32.mxu1 %vm303_vm4, %v1999_v11 }
0x129e   :  { %4139 = vmatmul.mubr.msk.f32.vlgmr.msra.gmra.mrb[28].mxu1 %vm303_vm4, %v2000_v12 }
0x129f   :  { %4145 = vmatprep.mubr.msk.f32.mxu1 %vm217_vm2, %v2089_v13 }
0x12a2   :  { %4384 = vmatpush3.bf16.xpose.msk.msra.mxu1 %vm4971_vm3, %v4379_v8 }
0x12a9   :  { %4146 = vmatmul.mubr.msk.f32.vlgmr.msra.gmra.mrb[30].mxu1 %vm217_vm2, %v2091_v14 }
0x1371   :  { %v5209_v17 = vpop.f32.mrb[28].mxu1 }
0x1372   :  { %v5211_v18 = vpop.f32.mrb[29].mxu1 }
0x137c   :  { %v4147_v19 = vpop.f32.mrb[30].mxu1 }
0x137d   :  { %v2170_v20 = vpop.f32.mrb[31].mxu1  ;;  %v2182_v21 = vsel %vm303_vm4, %v4147_v19, -inf }
0x137e   :  { %2183 = vmax.xlane.f32.xlu0 %v2182_v21  ;;  %v2179_v22 = vsel %vm303_vm4, %v2170_v20, -inf }
0x137f   :  { %2180 = vmax.xlane.f32.xlu1 %v2179_v22 }
0x140b   :  { %v2184_v23 = vpop.xlane.xlu0 %2183 }
0x140c   :  { %v2186_v24 = vsub.f32 %v4147_v19, %v2184_v23  ;;  %v2181_v25 = vpop.xlane.xlu1 %2180 }
0x140d   :  { %v2185_v38 = vsub.f32 %v2170_v20, %v2181_v25 }
0x140e   :  { %v2189_v26 = vmul.f32 1.442695, %v2186_v24 }
0x140f   :  { %v2187_v32 = vmul.f32 1.442695, %v2185_v38 }
0x1410   :  { %4725 = vpow2.f32 %v2189_v26 }
0x1411   :  { %4727 = vpow2.f32 %v2187_v32 }
0x141a   :  { %v4726_v30 = vpop.eup %4725 }
0x141b   :  { %v4728_v27 = vpop.eup %4727  ;;  %v2194_v35 = vsel %vm303_vm4, %v4726_v30, 0.0 }
0x141c   :  { %2195 = vadd.xlane.f32.xlu1 %v2194_v35  ;;  %v2191_v37 = vsel %vm303_vm4, %v4728_v27, 0.0 }
0x141d   :  { %2192 = vadd.xlane.f32.xlu0 %v2191_v37 }
0x142d   :  { %4594 = vrot.lane.b32.xlu1 %v5119_v46, %s4810_s7  ;;  %s4834_s7 = smov 28  }
0x1431   :  { %2288 = vrot.lane.b32.xlu1 %v5172_v31, %s4811_s8 }
0x1433   :  { %4589 = vrot.lane.b32.xlu0 %v5119_v46, %s4809_s6  ;;  %s4833_s6 = smov 24  }
0x1437   :  { %2290 = vrot.lane.b32.xlu0 %v5181_v33, %s4811_s8 }
0x14a9   :  { %v2196_v39 = vpop.xlane.xlu1 %2195 }
0x14aa   :  { %4729 = vrcp.f32 %v2196_v39  ;;  %v2193_v40 = vpop.xlane.xlu0 %2192 }
0x14ab   :  { %4731 = vrcp.f32 %v2193_v40 }
0x14ad   :  { %v4595_v41 = vpop.permute.xlu1 %4594 }
0x14ae   :  { %v4590_v42 = vpop.permute.xlu0 %4589  ;;  %v4597_v28 = vunpack.i.h.bf16 %v4595_v41  ;;  %v4596_v43 = vunpack.i.l.bf16 %v4595_v41 }
0x14af   :  { %v4592_v49 = vunpack.i.h.bf16 %v4590_v42  ;;  %v4591_v50 = vunpack.i.l.bf16 %v4590_v42 }
0x14b0   :  { %v4389_v52 = vpack.c.bf16 %v4597_v28, %v4596_v43 }
0x14b1   :  { %v4385_v51 = vpack.c.bf16 %v4592_v49, %v4591_v50  ;;  %v2289_v63 = vpop.permute.xlu1 %2288 }
0x14b2   :  { %v2291_v0 = vpop.permute.xlu0 %2290 }
0x14b3   :  { %4386 = vmatprep.subr.bf16.mxu0 %v4385_v51 }
0x14b4   :  { %v4730_v53 = vpop.eup %4729  ;;  %4388 = vmatpush3.bf16.msra.mxu0 %v4385_v51 }
0x14b5   :  { %v4732_v54 = vpop.eup %4731  ;;  %4391 = vmatprep.subr.msk.bf16.mxu0 %vm4971_vm3, %v4389_v52  ;;  %v2200_v62 = vmul.f32 %v4730_v53, %v4726_v30 }
0x14b6   :  { %v2199_v61 = vmul.f32 %v4732_v54, %v4728_v27 }
0x14b8   :  { %4152 = vmatprep.mubr.msk.f32.mxu0 %vm303_vm4, %v2199_v61 }
0x14b9   :  { %4153 = vmatmul.mubr.msk.f32.vlgmr.msra.gmra.mrb[14].mxu0 %vm303_vm4, %v2200_v62 }
0x14ba   :  { %4159 = vmatprep.mubr.msk.f32.mxu0 %vm217_vm2, %v2289_v63 }
0x14bd   :  { %4394 = vmatpush3.bf16.xpose.msk.msra.mxu0 %vm4971_vm3, %v4389_v52 }
0x14c4   :  { %4160 = vmatmul.mubr.msk.f32.vlgmr.msra.gmra.mrb[16].mxu0 %vm217_vm2, %v2291_v0 }
0x158c   :  { %v5233_v1 = vpop.f32.mrb[14].mxu0 }
0x158d   :  { %v5235_v2 = vpop.f32.mrb[15].mxu0 }
0x1597   :  { %v4161_v3 = vpop.f32.mrb[16].mxu0 }
0x1598   :  { %v2370_v5 = vpop.f32.mrb[17].mxu0  ;;  %v2382_v8 = vsel %vm303_vm4, %v4161_v3, -inf }
0x1599   :  { %2383 = vmax.xlane.f32.xlu0 %v2382_v8  ;;  %v2379_v9 = vsel %vm303_vm4, %v2370_v5, -inf }
0x159a   :  { %2380 = vmax.xlane.f32.xlu1 %v2379_v9 }
0x1626   :  { %v2384_v10 = vpop.xlane.xlu0 %2383 }
0x1627   :  { %v2386_v11 = vsub.f32 %v4161_v3, %v2384_v10  ;;  %v2381_v12 = vpop.xlane.xlu1 %2380 }
0x1628   :  { %v2385_v13 = vsub.f32 %v2370_v5, %v2381_v12 }
0x1629   :  { %v2389_v14 = vmul.f32 1.442695, %v2386_v11 }
0x162a   :  { %v2387_v19 = vmul.f32 1.442695, %v2385_v13 }
0x162b   :  { %4733 = vpow2.f32 %v2389_v14 }
0x162c   :  { %4735 = vpow2.f32 %v2387_v19 }
0x1635   :  { %v4734_v20 = vpop.eup %4733 }
0x1636   :  { %v4736_v21 = vpop.eup %4735  ;;  %v2394_v22 = vsel %vm303_vm4, %v4734_v20, 0.0 }
0x1637   :  { %2395 = vadd.xlane.f32.xlu1 %v2394_v22  ;;  %v2391_v23 = vsel %vm303_vm4, %v4736_v21, 0.0 }
0x1638   :  { %2392 = vadd.xlane.f32.xlu0 %v2391_v23 }
0x1648   :  { %4604 = vrot.lane.b32.xlu1 %v5119_v46, %s4812_s9 }
0x164c   :  { %2488 = vrot.lane.b32.xlu1 %v5172_v31, %s4813_s10 }
0x164e   :  { %4599 = vrot.lane.b32.xlu0 %v5119_v46, %s4814_s11 }
0x1652   :  { %2490 = vrot.lane.b32.xlu0 %v5181_v33, %s4813_s10 }
0x16c4   :  { %v2396_v24 = vpop.xlane.xlu1 %2395 }
0x16c5   :  { %4737 = vrcp.f32 %v2396_v24  ;;  %v2393_v25 = vpop.xlane.xlu0 %2392 }
0x16c6   :  { %4739 = vrcp.f32 %v2393_v25 }
0x16c8   :  { %v4605_v38 = vpop.permute.xlu1 %4604 }
0x16c9   :  { %v4600_v26 = vpop.permute.xlu0 %4599  ;;  %v4607_v32 = vunpack.i.h.bf16 %v4605_v38  ;;  %v4606_v30 = vunpack.i.l.bf16 %v4605_v38 }
0x16ca   :  { %v4602_v27 = vunpack.i.h.bf16 %v4600_v26  ;;  %v4601_v35 = vunpack.i.l.bf16 %v4600_v26 }
0x16cb   :  { %v4399_v39 = vpack.c.bf16 %v4607_v32, %v4606_v30 }
0x16cc   :  { %v4395_v37 = vpack.c.bf16 %v4602_v27, %v4601_v35  ;;  %v2489_v43 = vpop.permute.xlu1 %2488 }
0x16cd   :  { %v2491_v49 = vpop.permute.xlu0 %2490 }
0x16ce   :  { %4396 = vmatprep.subr.bf16.mxu1 %v4395_v37 }
0x16cf   :  { %v4738_v40 = vpop.eup %4737  ;;  %4398 = vmatpush3.bf16.msra.mxu1 %v4395_v37 }
0x16d0   :  { %v4740_v41 = vpop.eup %4739  ;;  %4401 = vmatprep.subr.msk.bf16.mxu1 %vm4971_vm3, %v4399_v39  ;;  %v2400_v28 = vmul.f32 %v4738_v40, %v4734_v20 }
0x16d1   :  { %v2399_v42 = vmul.f32 %v4740_v41, %v4736_v21 }
0x16d3   :  { %4166 = vmatprep.mubr.msk.f32.mxu1 %vm303_vm4, %v2399_v42 }
0x16d4   :  { %4167 = vmatmul.mubr.msk.f32.vlgmr.msra.gmra.mrb[32].mxu1 %vm303_vm4, %v2400_v28 }
0x16d5   :  { %4173 = vmatprep.mubr.msk.f32.mxu1 %vm217_vm2, %v2489_v43 }
0x16d8   :  { %4404 = vmatpush3.bf16.xpose.msk.msra.mxu1 %vm4971_vm3, %v4399_v39 }
0x16df   :  { %4174 = vmatmul.mubr.msk.f32.vlgmr.msra.gmra.mrb[34].mxu1 %vm217_vm2, %v2491_v49 }
0x17a7   :  { %v5257_v50 = vpop.f32.mrb[32].mxu1 }
0x17a8   :  { %v5259_v51 = vpop.f32.mrb[33].mxu1 }
0x17b2   :  { %v4175_v52 = vpop.f32.mrb[34].mxu1 }
0x17b3   :  { %v2570_v53 = vpop.f32.mrb[35].mxu1  ;;  %v2582_v54 = vsel %vm303_vm4, %v4175_v52, -inf }
0x17b4   :  { %2583 = vmax.xlane.f32.xlu0 %v2582_v54  ;;  %v2579_v61 = vsel %vm303_vm4, %v2570_v53, -inf }
0x17b5   :  { %2580 = vmax.xlane.f32.xlu1 %v2579_v61 }
0x1841   :  { %v2584_v62 = vpop.xlane.xlu0 %2583 }
0x1842   :  { %v2586_v63 = vsub.f32 %v4175_v52, %v2584_v62  ;;  %v2581_v0 = vpop.xlane.xlu1 %2580 }
0x1843   :  { %v2585_v3 = vsub.f32 %v2570_v53, %v2581_v0 }
0x1844   :  { %v2589_v5 = vmul.f32 1.442695, %v2586_v63 }
0x1845   :  { %v2587_v8 = vmul.f32 1.442695, %v2585_v3 }
0x1846   :  { %4741 = vpow2.f32 %v2589_v5 }
0x1847   :  { %4743 = vpow2.f32 %v2587_v8 }
0x1850   :  { %v4742_v9 = vpop.eup %4741 }
0x1851   :  { %v4744_v10 = vpop.eup %4743  ;;  %v2594_v11 = vsel %vm303_vm4, %v4742_v9, 0.0 }
0x1852   :  { %2595 = vadd.xlane.f32.xlu1 %v2594_v11  ;;  %v2591_v12 = vsel %vm303_vm4, %v4744_v10, 0.0 }
0x1853   :  { %2592 = vadd.xlane.f32.xlu0 %v2591_v12 }
0x1863   :  { %4614 = vrot.lane.b32.xlu1 %v5119_v46, %s4815_s12 }
0x1867   :  { %2688 = vrot.lane.b32.xlu1 %v5172_v31, %s4816_s13 }
0x1869   :  { %4609 = vrot.lane.b32.xlu0 %v5119_v46, %s4817_s14 }
0x186d   :  { %2690 = vrot.lane.b32.xlu0 %v5181_v33, %s4816_s13 }
0x18df   :  { %v2596_v13 = vpop.xlane.xlu1 %2595 }
0x18e0   :  { %4745 = vrcp.f32 %v2596_v13  ;;  %v2593_v14 = vpop.xlane.xlu0 %2592 }
0x18e1   :  { %4747 = vrcp.f32 %v2593_v14 }
0x18e3   :  { %v4615_v19 = vpop.permute.xlu1 %4614 }
0x18e4   :  { %v4610_v20 = vpop.permute.xlu0 %4609  ;;  %v4617_v21 = vunpack.i.h.bf16 %v4615_v19  ;;  %v4616_v22 = vunpack.i.l.bf16 %v4615_v19 }
0x18e5   :  { %v4612_v23 = vunpack.i.h.bf16 %v4610_v20  ;;  %v4611_v24 = vunpack.i.l.bf16 %v4610_v20 }
0x18e6   :  { %v4409_v38 = vpack.c.bf16 %v4617_v21, %v4616_v22 }
0x18e7   :  { %v4405_v25 = vpack.c.bf16 %v4612_v23, %v4611_v24  ;;  %v2689_v35 = vpop.permute.xlu1 %2688 }
0x18e8   :  { %v2691_v37 = vpop.permute.xlu0 %2690 }
0x18e9   :  { %4406 = vmatprep.subr.bf16.mxu0 %v4405_v25 }
0x18ea   :  { %v4746_v26 = vpop.eup %4745  ;;  %4408 = vmatpush3.bf16.msra.mxu0 %v4405_v25 }
0x18eb   :  { %v4748_v32 = vpop.eup %4747  ;;  %4411 = vmatprep.subr.msk.bf16.mxu0 %vm4971_vm3, %v4409_v38  ;;  %v2600_v27 = vmul.f32 %v4746_v26, %v4742_v9 }
0x18ec   :  { %v2599_v30 = vmul.f32 %v4748_v32, %v4744_v10 }
0x18ee   :  { %4180 = vmatprep.mubr.msk.f32.mxu0 %vm303_vm4, %v2599_v30 }
0x18ef   :  { %4181 = vmatmul.mubr.msk.f32.vlgmr.msra.gmra.mrb[18].mxu0 %vm303_vm4, %v2600_v27 }
0x18f0   :  { %4187 = vmatprep.mubr.msk.f32.mxu0 %vm217_vm2, %v2689_v35 }
0x18f3   :  { %4414 = vmatpush3.bf16.xpose.msk.msra.mxu0 %vm4971_vm3, %v4409_v38 }
0x18fa   :  { %4188 = vmatmul.mubr.msk.f32.vlgmr.msra.gmra.mrb[20].mxu0 %vm217_vm2, %v2691_v37 }
0x19c2   :  { %v5281_v39 = vpop.f32.mrb[18].mxu0 }
0x19c3   :  { %v5283_v40 = vpop.f32.mrb[19].mxu0 }
0x19cd   :  { %v4189_v41 = vpop.f32.mrb[20].mxu0 }
0x19ce   :  { %v2770_v42 = vpop.f32.mrb[21].mxu0  ;;  %v2782_v28 = vsel %vm303_vm4, %v4189_v41, -inf }
0x19cf   :  { %2783 = vmax.xlane.f32.xlu0 %v2782_v28  ;;  %v2779_v43 = vsel %vm303_vm4, %v2770_v42, -inf }
0x19d0   :  { %2780 = vmax.xlane.f32.xlu1 %v2779_v43 }
0x1a5c   :  { %v2784_v49 = vpop.xlane.xlu0 %2783 }
0x1a5d   :  { %v2786_v52 = vsub.f32 %v4189_v41, %v2784_v49  ;;  %v2781_v53 = vpop.xlane.xlu1 %2780 }
0x1a5e   :  { %v2785_v54 = vsub.f32 %v2770_v42, %v2781_v53 }
0x1a5f   :  { %v2789_v61 = vmul.f32 1.442695, %v2786_v52 }
0x1a60   :  { %v2787_v62 = vmul.f32 1.442695, %v2785_v54 }
0x1a61   :  { %4749 = vpow2.f32 %v2789_v61 }
0x1a62   :  { %4751 = vpow2.f32 %v2787_v62 }
0x1a6b   :  { %v4750_v63 = vpop.eup %4749 }
0x1a6c   :  { %v4752_v0 = vpop.eup %4751  ;;  %v2794_v3 = vsel %vm303_vm4, %v4750_v63, 0.0 }
0x1a6d   :  { %2795 = vadd.xlane.f32.xlu1 %v2794_v3  ;;  %v2791_v5 = vsel %vm303_vm4, %v4752_v0, 0.0 }
0x1a6e   :  { %2792 = vadd.xlane.f32.xlu0 %v2791_v5 }
0x1a7e   :  { %4624 = vrot.lane.b32.xlu1 %v5119_v46, %s4818_s15 }
0x1a82   :  { %2888 = vrot.lane.b32.xlu1 %v5172_v31, %s4819_s16 }
0x1a84   :  { %4619 = vrot.lane.b32.xlu0 %v5119_v46, %s4820_s17  ;;  %s4835_s17 = smov [#allocation2]  }
0x1a88   :  { %2890 = vrot.lane.b32.xlu0 %v5181_v33, %s4819_s16 }
0x1afa   :  { %v2796_v8 = vpop.xlane.xlu1 %2795 }
0x1afb   :  { %4753 = vrcp.f32 %v2796_v8  ;;  %v2793_v9 = vpop.xlane.xlu0 %2792 }
0x1afc   :  { %4755 = vrcp.f32 %v2793_v9 }
0x1afe   :  { %v4625_v10 = vpop.permute.xlu1 %4624 }
0x1aff   :  { %v4620_v11 = vpop.permute.xlu0 %4619  ;;  %v4627_v12 = vunpack.i.h.bf16 %v4625_v10  ;;  %v4626_v13 = vunpack.i.l.bf16 %v4625_v10 }
0x1b00   :  { %v4622_v14 = vunpack.i.h.bf16 %v4620_v11  ;;  %v4621_v19 = vunpack.i.l.bf16 %v4620_v11 }
0x1b01   :  { %v4419_v21 = vpack.c.bf16 %v4627_v12, %v4626_v13 }
0x1b02   :  { %v4415_v20 = vpack.c.bf16 %v4622_v14, %v4621_v19  ;;  %v2889_v38 = vpop.permute.xlu1 %2888 }
0x1b03   :  { %v2891_v26 = vpop.permute.xlu0 %2890 }
0x1b04   :  { %4416 = vmatprep.subr.bf16.mxu1 %v4415_v20 }
0x1b05   :  { %v4754_v22 = vpop.eup %4753  ;;  %4418 = vmatpush3.bf16.msra.mxu1 %v4415_v20 }
0x1b06   :  { %v4756_v23 = vpop.eup %4755  ;;  %4421 = vmatprep.subr.msk.bf16.mxu1 %vm4971_vm3, %v4419_v21  ;;  %v2800_v25 = vmul.f32 %v4754_v22, %v4750_v63 }
0x1b07   :  { %v2799_v24 = vmul.f32 %v4756_v23, %v4752_v0 }
0x1b09   :  { %4194 = vmatprep.mubr.msk.f32.mxu1 %vm303_vm4, %v2799_v24 }
0x1b0a   :  { %4195 = vmatmul.mubr.msk.f32.vlgmr.msra.gmra.mrb[36].mxu1 %vm303_vm4, %v2800_v25 }
0x1b0b   :  { %4201 = vmatprep.mubr.msk.f32.mxu1 %vm217_vm2, %v2889_v38 }
0x1b0e   :  { %4424 = vmatpush3.bf16.xpose.msk.msra.mxu1 %vm4971_vm3, %v4419_v21 }
0x1b15   :  { %4202 = vmatmul.mubr.msk.f32.vlgmr.msra.gmra.mrb[38].mxu1 %vm217_vm2, %v2891_v26 }
0x1bdd   :  { %v5305_v32 = vpop.f32.mrb[36].mxu1 }
0x1bde   :  { %v5307_v30 = vpop.f32.mrb[37].mxu1 }
0x1be8   :  { %v4203_v27 = vpop.f32.mrb[38].mxu1 }
0x1be9   :  { %v2970_v35 = vpop.f32.mrb[39].mxu1  ;;  %v2982_v37 = vsel %vm303_vm4, %v4203_v27, -inf }
0x1bea   :  { %2983 = vmax.xlane.f32.xlu0 %v2982_v37  ;;  %v2979_v41 = vsel %vm303_vm4, %v2970_v35, -inf }
0x1beb   :  { %2980 = vmax.xlane.f32.xlu1 %v2979_v41 }
0x1c77   :  { %v2984_v42 = vpop.xlane.xlu0 %2983 }
0x1c78   :  { %v2986_v28 = vsub.f32 %v4203_v27, %v2984_v42  ;;  %v2981_v43 = vpop.xlane.xlu1 %2980 }
0x1c79   :  { %v2985_v49 = vsub.f32 %v2970_v35, %v2981_v43 }
0x1c7a   :  { %v2989_v52 = vmul.f32 1.442695, %v2986_v28 }
0x1c7b   :  { %v2987_v53 = vmul.f32 1.442695, %v2985_v49 }
0x1c7c   :  { %4757 = vpow2.f32 %v2989_v52 }
0x1c7d   :  { %4759 = vpow2.f32 %v2987_v53 }
0x1c86   :  { %v4758_v54 = vpop.eup %4757 }
0x1c87   :  { %v4760_v61 = vpop.eup %4759  ;;  %v2994_v62 = vsel %vm303_vm4, %v4758_v54, 0.0 }
0x1c88   :  { %2995 = vadd.xlane.f32.xlu1 %v2994_v62  ;;  %v2991_v63 = vsel %vm303_vm4, %v4760_v61, 0.0 }
0x1c89   :  { %2992 = vadd.xlane.f32.xlu0 %v2991_v63 }
0x1c99   :  { %4634 = vrot.lane.b32.xlu1 %v5119_v46, %s4821_s22 }
0x1c9d   :  { %3088 = vrot.lane.b32.xlu1 %v5172_v31, %s4822_s2 }
0x1c9f   :  { %4629 = vrot.lane.b32.xlu0 %v5119_v46, %s4823_s1 }
0x1ca3   :  { %3090 = vrot.lane.b32.xlu0 %v5181_v33, %s4822_s2 }
0x1d15   :  { %v2996_v0 = vpop.xlane.xlu1 %2995 }
0x1d16   :  { %4761 = vrcp.f32 %v2996_v0  ;;  %v2993_v3 = vpop.xlane.xlu0 %2992 }
0x1d17   :  { %4763 = vrcp.f32 %v2993_v3 }
0x1d19   :  { %v4635_v5 = vpop.permute.xlu1 %4634 }
0x1d1a   :  { %v4630_v8 = vpop.permute.xlu0 %4629  ;;  %v4637_v9 = vunpack.i.h.bf16 %v4635_v5  ;;  %v4636_v10 = vunpack.i.l.bf16 %v4635_v5 }
0x1d1b   :  { %v4632_v11 = vunpack.i.h.bf16 %v4630_v8  ;;  %v4631_v12 = vunpack.i.l.bf16 %v4630_v8 }
0x1d1c   :  { %v4429_v14 = vpack.c.bf16 %v4637_v9, %v4636_v10 }
0x1d1d   :  { %v4425_v13 = vpack.c.bf16 %v4632_v11, %v4631_v12  ;;  %v3089_v23 = vpop.permute.xlu1 %3088 }
0x1d1e   :  { %v3091_v24 = vpop.permute.xlu0 %3090 }
0x1d1f   :  { %4426 = vmatprep.subr.bf16.mxu0 %v4425_v13 }
0x1d20   :  { %v4762_v19 = vpop.eup %4761  ;;  %4428 = vmatpush3.bf16.msra.mxu0 %v4425_v13 }
0x1d21   :  { %v4764_v20 = vpop.eup %4763  ;;  %4431 = vmatprep.subr.msk.bf16.mxu0 %vm4971_vm3, %v4429_v14  ;;  %v3000_v22 = vmul.f32 %v4762_v19, %v4758_v54 }
0x1d22   :  { %v2999_v21 = vmul.f32 %v4764_v20, %v4760_v61 }
0x1d24   :  { %4208 = vmatprep.mubr.msk.f32.mxu0 %vm303_vm4, %v2999_v21 }
0x1d25   :  { %4209 = vmatmul.mubr.msk.f32.vlgmr.msra.gmra.mrb[22].mxu0 %vm303_vm4, %v3000_v22 }
0x1d26   :  { %4215 = vmatprep.mubr.msk.f32.mxu0 %vm217_vm2, %v3089_v23 }
0x1d29   :  { %4434 = vmatpush3.bf16.xpose.msk.msra.mxu0 %vm4971_vm3, %v4429_v14 }
0x1d30   :  { %4216 = vmatmul.mubr.msk.f32.vlgmr.msra.gmra.mrb[24].mxu0 %vm217_vm2, %v3091_v24 }
0x1df8   :  { %v5329_v25 = vpop.f32.mrb[22].mxu0 }
0x1df9   :  { %v5331_v38 = vpop.f32.mrb[23].mxu0 }
0x1e03   :  { %v4217_v26 = vpop.f32.mrb[24].mxu0 }
0x1e04   :  { %v3170_v27 = vpop.f32.mrb[25].mxu0  ;;  %v3182_v35 = vsel %vm303_vm4, %v4217_v26, -inf }
0x1e05   :  { %3183 = vmax.xlane.f32.xlu0 %v3182_v35  ;;  %v3179_v37 = vsel %vm303_vm4, %v3170_v27, -inf }
0x1e06   :  { %3180 = vmax.xlane.f32.xlu1 %v3179_v37 }
0x1e92   :  { %v3184_v41 = vpop.xlane.xlu0 %3183 }
0x1e93   :  { %v3186_v42 = vsub.f32 %v4217_v26, %v3184_v41  ;;  %v3181_v28 = vpop.xlane.xlu1 %3180 }
0x1e94   :  { %v3185_v43 = vsub.f32 %v3170_v27, %v3181_v28 }
0x1e95   :  { %v3189_v49 = vmul.f32 1.442695, %v3186_v42 }
0x1e96   :  { %v3187_v52 = vmul.f32 1.442695, %v3185_v43 }
0x1e97   :  { %4765 = vpow2.f32 %v3189_v49 }
0x1e98   :  { %4767 = vpow2.f32 %v3187_v52 }
0x1ea1   :  { %v4766_v53 = vpop.eup %4765 }
0x1ea2   :  { %v4768_v54 = vpop.eup %4767  ;;  %v3194_v61 = vsel %vm303_vm4, %v4766_v53, 0.0 }
0x1ea3   :  { %3195 = vadd.xlane.f32.xlu1 %v3194_v61  ;;  %v3191_v62 = vsel %vm303_vm4, %v4768_v54, 0.0 }
0x1ea4   :  { %3192 = vadd.xlane.f32.xlu0 %v3191_v62 }
0x1eb4   :  { %4644 = vrot.lane.b32.xlu1 %v5119_v46, %s4826_s25 }
0x1eb8   :  { %3288 = vrot.lane.b32.xlu1 %v5172_v31, %s4825_s24 }
0x1eba   :  { %4639 = vrot.lane.b32.xlu0 %v5119_v46, %s4824_s23 }
0x1ebe   :  { %3290 = vrot.lane.b32.xlu0 %v5181_v33, %s4825_s24 }
0x1f30   :  { %v3196_v63 = vpop.xlane.xlu1 %3195 }
0x1f31   :  { %4769 = vrcp.f32 %v3196_v63  ;;  %v3193_v0 = vpop.xlane.xlu0 %3192 }
0x1f32   :  { %4771 = vrcp.f32 %v3193_v0 }
0x1f34   :  { %v4645_v3 = vpop.permute.xlu1 %4644 }
0x1f35   :  { %v4640_v5 = vpop.permute.xlu0 %4639  ;;  %v4647_v8 = vunpack.i.h.bf16 %v4645_v3  ;;  %v4646_v9 = vunpack.i.l.bf16 %v4645_v3 }
0x1f36   :  { %v4642_v10 = vunpack.i.h.bf16 %v4640_v5  ;;  %v4641_v11 = vunpack.i.l.bf16 %v4640_v5 }
0x1f37   :  { %v4439_v13 = vpack.c.bf16 %v4647_v8, %v4646_v9 }
0x1f38   :  { %v4435_v12 = vpack.c.bf16 %v4642_v10, %v4641_v11  ;;  %v3289_v20 = vpop.permute.xlu1 %3288 }
0x1f39   :  { %v3291_v21 = vpop.permute.xlu0 %3290 }
0x1f3a   :  { %4436 = vmatprep.subr.bf16.mxu1 %v4435_v12 }
0x1f3b   :  { %v4770_v31 = vpop.eup %4769  ;;  %4438 = vmatpush3.bf16.msra.mxu1 %v4435_v12 }
0x1f3c   :  { %v4772_v14 = vpop.eup %4771  ;;  %4441 = vmatprep.subr.msk.bf16.mxu1 %vm4971_vm3, %v4439_v13  ;;  %v3200_v19 = vmul.f32 %v4770_v31, %v4766_v53 }
0x1f3d   :  { %v3199_v33 = vmul.f32 %v4772_v14, %v4768_v54 }
0x1f3f   :  { %4222 = vmatprep.mubr.msk.f32.mxu1 %vm303_vm4, %v3199_v33 }
0x1f40   :  { %4223 = vmatmul.mubr.msk.f32.vlgmr.msra.gmra.mrb[40].mxu1 %vm303_vm4, %v3200_v19 }
0x1f41   :  { %4229 = vmatprep.mubr.msk.f32.mxu1 %vm217_vm2, %v3289_v20 }
0x1f44   :  { %4444 = vmatpush3.bf16.xpose.msk.msra.mxu1 %vm4971_vm3, %v4439_v13 }
0x1f4b   :  { %4230 = vmatmul.mubr.msk.f32.vlgmr.msra.gmra.mrb[42].mxu1 %vm217_vm2, %v3291_v21 }
0x2013   :  { %v4224_v22 = vpop.f32.mrb[40].mxu1 }
0x2014   :  { %v3279_v23 = vpop.f32.mrb[41].mxu1 }
0x201e   :  { %v4231_v24 = vpop.f32.mrb[42].mxu1 }
0x201f   :  { %v3370_v26 = vpop.f32.mrb[43].mxu1  ;;  %v3382_v27 = vsel %vm303_vm4, %v4231_v24, -inf }
0x2020   :  { %v3379_v35 = vsel %vm303_vm4, %v3370_v26, -inf  ;;  %3383 = vmax.xlane.f32.xlu0 %v3382_v27 }
0x2021   :  { %3380 = vmax.xlane.f32.xlu1 %v3379_v35 }
0x20ad   :  { %v3384_v37 = vpop.xlane.xlu0 %3383 }
0x20ae   :  { %v3386_v41 = vsub.f32 %v4231_v24, %v3384_v37  ;;  %v3381_v42 = vpop.xlane.xlu1 %3380 }
0x20af   :  { %v3385_v28 = vsub.f32 %v3370_v26, %v3381_v42 }
0x20b0   :  { %v3389_v43 = vmul.f32 1.442695, %v3386_v41 }
0x20b1   :  { %v3387_v36 = vmul.f32 1.442695, %v3385_v28 }
0x20b2   :  { %4773 = vpow2.f32 %v3389_v43 }
0x20b3   :  { %4775 = vpow2.f32 %v3387_v36 }
0x20bc   :  { %v4774_v49 = vpop.eup %4773 }
0x20bd   :  { %v4776_v52 = vpop.eup %4775  ;;  %v3394_v53 = vsel %vm303_vm4, %v4774_v49, 0.0 }
0x20be   :  { %3395 = vadd.xlane.f32.xlu1 %v3394_v53  ;;  %v3391_v54 = vsel %vm303_vm4, %v4776_v52, 0.0 }
0x20bf   :  { %3392 = vadd.xlane.f32.xlu0 %v3391_v54 }
0x20cf   :  { %1815 = vrot.lane.b32.xlu1 %v5029_v45, %s4828_s27 }
0x20d3   :  { %1817 = vrot.lane.b32.xlu1 %v5027_v44, %s4828_s27 }
0x20d5   :  { %4649 = vrot.lane.b32.xlu0 %v5119_v46, %s4827_s26 }
0x20d7   :  { %1825 = vrot.lane.b32.xlu1 %v5051_v15, %s4829_s0 }
0x20d9   :  { %1823 = vrot.lane.b32.xlu0 %v5053_v16, %s4829_s0 }
0x20db   :  { %1833 = vrot.lane.b32.xlu1 %v5075_v55, %s4830_s28  ;;  %v3558_v55 = vld [vmem:[%s5472_s3] sm:$0xff] }
0x20dd   :  { %1831 = vrot.lane.b32.xlu0 %v5077_v56, %s4830_s28  ;;  %v3559_v56 = vld [vmem:[%s5472_s3 + $0x8] sm:$0xff] }
0x20df   :  { %1841 = vrot.lane.b32.xlu1 %v5121_v47, %s4831_s29 }
0x20e1   :  { %1839 = vrot.lane.b32.xlu0 %v5123_v48, %s4831_s29 }
0x20e3   :  { %3490 = vrot.lane.b32.xlu1 %v5235_v2, %s4828_s27 }
0x20e5   :  { %1847 = vrot.lane.b32.xlu0 %v5155_v58, %s4832_s30  ;;  %v4449_v58 = vpack.c.bf16 %v3559_v56, %v3558_v55 }
0x20e7   :  { %1855 = vrot.lane.b32.xlu1 %v5159_v60, %s4833_s6 }
0x20e9   :  { %1849 = vrot.lane.b32.xlu0 %v5153_v57, %s4832_s30 }
0x20eb   :  { %3498 = vrot.lane.b32.xlu1 %v5259_v51, %s4829_s0  ;;  %v3560_v51 = vld [vmem:[%s5472_s3 + $0x10] sm:$0xff] }
0x20ed   :  { %3492 = vrot.lane.b32.xlu0 %v5233_v1, %s4828_s27 }
0x20ef   :  { %1863 = vrot.lane.b32.xlu1 %v5187_v29, %s4834_s7 }
0x20f1   :  { %1857 = vrot.lane.b32.xlu0 %v5157_v59, %s4833_s6 }
0x20f3   :  { %3506 = vrot.lane.b32.xlu1 %v5283_v40, %s4830_s28 }
0x20f5   :  { %3500 = vrot.lane.b32.xlu0 %v5257_v50, %s4829_s0 }
0x20f7   :  { %3508 = vrot.lane.b32.xlu1 %v5281_v39, %s4830_s28  ;;  %v3561_v39 = vld [vmem:[%s5472_s3 + $0x18] sm:$0xff] }
0x20f9   :  { %1865 = vrot.lane.b32.xlu0 %v5185_v34, %s4834_s7 }
0x20fb   :  { %3516 = vrot.lane.b32.xlu1 %v5305_v32, %s4831_s29 }
0x20fd   :  { %3514 = vrot.lane.b32.xlu0 %v5307_v30, %s4831_s29  ;;  %v4455_v30 = vpack.c.bf16 %v3561_v39, %v3560_v51 }
0x20ff   :  { %3524 = vrot.lane.b32.xlu1 %v5329_v25, %s4832_s30 }
0x2101   :  { %3522 = vrot.lane.b32.xlu0 %v5331_v38, %s4832_s30 }
0x2103   :  { %3532 = vrot.lane.b32.xlu1 %v4224_v22, %s4833_s6 }
0x2105   :  { %3530 = vrot.lane.b32.xlu0 %v3279_v23, %s4833_s6 }
0x214b   :  { %v3396_v44 = vpop.xlane.xlu1 %3395 }
0x214c   :  { %4777 = vrcp.f32 %v3396_v44  ;;  %v3393_v45 = vpop.xlane.xlu0 %3392 }
0x214d   :  { %4779 = vrcp.f32 %v3393_v45 }
0x214f   :  { %v1816_v15 = vpop.permute.xlu1 %1815 }
0x2150   :  { %v4650_v16 = vpop.permute.xlu0 %4649  ;;  %v1869_v8 = vsel %vm217_vm2, %v5005_v7, %v1816_v15 }
0x2151   :  { %v4652_v46 = vunpack.i.h.bf16 %v4650_v16  ;;  %v4651_v47 = vunpack.i.l.bf16 %v4650_v16 }
0x2153   :  { %v4445_v48 = vpack.c.bf16 %v4652_v46, %v4651_v47  ;;  %v1818_v57 = vpop.permute.xlu1 %1817  ;;  %v3814_v46 = vld [vmem:[%s5473_s4] ss:$0 sm:$0xff]  ;;  %s3687_s4 = sshll.u32 %s4835_s17, 4  ;;  %s3688_s4 = int_to_ptr.vmem [resolvable:$true] %s3687_s4 }
0x2154   :  { %v1824_v59 = vpop.permute.xlu0 %1823  ;;  %s4781_s18 = scalar_lea.vmem %s3688_s4, 512  ;;  %p4786_p1 = scmp.lt.s32.totalorder %s3688_s4, %s3688_s4 }
0x2155   :  { %4446 = vmatprep.subr.bf16.mxu0 %v4445_v48  ;;  %v1872_v9 = vsel %vm1871_vm5, %v1869_v8, %v1824_v59  ;;  %p4782_p0 = scmp.ne.s32.totalorder %s3688_s4, %s4781_s18  ;;  %p4787_p2 = scmp.lt.s32.totalorder %s4781_s18, %s4781_s18 }
0x2156   :  { %v4778_v60 = vpop.eup %4777  ;;  %4448 = vmatpush3.bf16.msra.mxu0 %v4445_v48 }
0x2157   :  { %v4780_v34 = vpop.eup %4779  ;;  %v1826_v29 = vpop.permute.xlu1 %1825  ;;  %4451 = vmatprep.subr.msk.bf16.mxu0 %vm4878_vm1, %v4449_v58  ;;  %v3400_v50 = vmul.f32 %v4778_v60, %v4774_v49  ;;  %p4788_p3 = por %p4787_p2, %p4786_p1 }
0x2158   :  { %v1832_v1 = vpop.permute.xlu0 %1831  ;;  %v3399_v2 = vmul.f32 %v4780_v34, %v4776_v52 }
0x2159   :  { %p4789_p4 = pnand %p4788_p3, %p4782_p0 }
0x215a   :  { %4236 = vmatprep.mubr.msk.f32.mxu0 %vm303_vm4, %v3399_v2 }
0x215b   :  { %4237 = vmatmul.mubr.msk.f32.vlgmr.msra.gmra.mrb[26].mxu0 %vm303_vm4, %v3400_v50  ;;  %v1834_v40 = vpop.permute.xlu1 %1833 }
0x215c   :  { %v1840_v32 = vpop.permute.xlu0 %1839 }
0x215f   :  { %v1842_v25 = vpop.permute.xlu1 %1841  ;;  %4454 = vmatpush3.bf16.xpose.msk.msra.mxu0 %vm4878_vm1, %v4449_v58 }
0x2160   :  { %v1848_v38 = vpop.permute.xlu0 %1847  ;;  %4457 = vmatprep.subr.msk.bf16.mxu0 %vm4878_vm1, %v4455_v30 }
0x2163   :  { %v3491_v61 = vpop.permute.xlu1 %3490 }
0x2164   :  { %v3544_v62 = vsel %vm217_vm2, %v5211_v18, %v3491_v61  ;;  %v1850_v63 = vpop.permute.xlu0 %1849  ;;  %v1875_v18 = vsel %vm1874_vm6, %v1872_v9, %v1832_v1 }
0x2165   :  { %v1877_v12 = vsel %vm303_vm4, %v1875_v18, %v1840_v32 }
0x2166   :  { %v1880_v13 = vsel %vm1879_vm7, %v1877_v12, %v1848_v38 }
0x2167   :  { %v1856_v0 = vpop.permute.xlu1 %1855  ;;  %4460 = vmatpush3.bf16.xpose.msk.msra.mxu0 %vm4878_vm1, %v4455_v30 }
0x2168   :  { %v3493_v3 = vpop.permute.xlu0 %3492  ;;  %v1883_v7 = vsel %vm1882_vm8, %v1880_v13, %v1856_v0 }
0x2169   :  { %v3545_v5 = vsel %vm217_vm2, %v5209_v17, %v3493_v3  ;;  %v1870_v17 = vsel %vm217_vm2, %v5003_v6, %v1818_v57 }
0x216a   :  { %v1873_v14 = vsel %vm1871_vm5, %v1870_v17, %v1826_v29 }
0x216b   :  { %v3499_v10 = vpop.permute.xlu1 %3498  ;;  %v1876_v20 = vsel %vm1874_vm6, %v1873_v14, %v1834_v40 }
0x216c   :  { %v3546_v11 = vsel %vm1871_vm5, %v3544_v62, %v3499_v10  ;;  %v1858_v4 = vpop.permute.xlu0 %1857  ;;  %v1878_v22 = vsel %vm303_vm4, %v1876_v20, %v1842_v25 }
0x216d   :  { %v1881_v23 = vsel %vm1879_vm7, %v1878_v22, %v1850_v63 }
0x216e   :  { %v1884_v6 = vsel %vm1882_vm8, %v1881_v23, %v1858_v4 }
0x216f   :  { %v1864_v31 = vpop.permute.xlu1 %1863 }
0x2170   :  { %v1886_v33 = vsel %vm1885_vm9, %v1883_v7, %v1864_v31  ;;  %v3501_v19 = vpop.permute.xlu0 %3500 }
0x2171   :  { %v3547_v21 = vsel %vm1871_vm5, %v3545_v5, %v3501_v19  ;;  %4247 = vmatprep.mubr.msk.f32.mxu0 %vm41_vm0, %v1886_v33 }
0x2173   :  { %v3507_v24 = vpop.permute.xlu1 %3506 }
0x2174   :  { %v3548_v26 = vsel %vm1874_vm6, %v3546_v11, %v3507_v24  ;;  %v1866_v27 = vpop.permute.xlu0 %1865 }
0x2175   :  { %v1887_v35 = vsel %vm1885_vm9, %v1884_v6, %v1866_v27 }
0x2176   :  { %4248 = vmatmul.mubr.msk.f32.vlgmr.msra.gmra.mrb[28].mxu0 %vm41_vm0, %v1887_v35 }
0x2177   :  { %v3509_v37 = vpop.permute.xlu1 %3508 }
0x2178   :  { %v3549_v41 = vsel %vm1874_vm6, %v3547_v21, %v3509_v37  ;;  %v3515_v42 = vpop.permute.xlu0 %3514 }
0x2179   :  { %v3550_v43 = vsel %vm303_vm4, %v3548_v26, %v3515_v42 }
0x217b   :  { %v3517_v28 = vpop.permute.xlu1 %3516 }
0x217c   :  { %v3523_v36 = vpop.permute.xlu0 %3522  ;;  %v3551_v52 = vsel %vm303_vm4, %v3549_v41, %v3517_v28 }
0x217d   :  { %v3552_v49 = vsel %vm1879_vm7, %v3550_v43, %v3523_v36 }
0x217f   :  { %v3525_v53 = vpop.permute.xlu1 %3524 }
0x2180   :  { %v3553_v54 = vsel %vm1879_vm7, %v3551_v52, %v3525_v53  ;;  %v3531_v44 = vpop.permute.xlu0 %3530 }
0x2181   :  { %v3554_v45 = vsel %vm1882_vm8, %v3552_v49, %v3531_v44 }
0x2183   :  { %v3533_v15 = vpop.permute.xlu1 %3532 }
0x2184   :  { %v3555_v16 = vsel %vm1882_vm8, %v3553_v54, %v3533_v15 }
0x222e   :  { %v4238_v55 = vpop.f32.mrb[26].mxu0 }
0x222f   :  { %3540 = vrot.lane.b32.xlu1 %v4238_v55, %s4834_s7  ;;  %v3479_v56 = vpop.f32.mrb[27].mxu0 }
0x2230   :  { %3538 = vrot.lane.b32.xlu0 %v3479_v56, %s4834_s7 }
0x2249   :  { %v4249_v47 = vpop.f32.mrb[28].mxu0 }
0x224a   :  { %v3665_v48 = vadd.f32 %v4249_v47, %v3814_v46  ;;  %v3659_v57 = vpop.f32.mrb[29].mxu0 }
0x224b   :  { %v3660_v58 = vadd.f32 %v3814_v46, %v3659_v57 }
0x224c   :  { %3679 = vst.msk [vmem:[#allocation2 + $0x8] sm:$0xff] %vm41_vm0, %v3665_v48 }
0x224d   :  { %3678 = vst.msk [vmem:[#allocation2] sm:$0xff] %vm41_vm0, %v3660_v58 }
0x22a1   :  { %v3541_v59 = vpop.permute.xlu1 %3540 }
0x22a2   :  { %v3539_v60 = vpop.permute.xlu0 %3538  ;;  %v3557_v29 = vsel %vm1885_vm9, %v3555_v16, %v3541_v59 }
0x22a3   :  { %v3556_v34 = vsel %vm1885_vm9, %v3554_v45, %v3539_v60 }
0x22a4   :  { %4250 = vmatprep.mubr.msk.f32.mxu0 %vm41_vm0, %v3556_v34 }
0x22a5   :  { %4251 = vmatmul.mubr.msk.f32.gmra.mrb[30].mxu0 %vm41_vm0, %v3557_v29 }
0x2378   :  { %v4252_v1 = vpop.f32.mrb[30].mxu0 }
0x2379   :  { %v3675_v2 = vadd.f32 %v4252_v1, %v3814_v46  ;;  %v3669_v50 = vpop.f32.mrb[31].mxu0 }
0x237a   :  { %v3670_v51 = vadd.f32 %v3814_v46, %v3669_v50 }
0x237b   :  { %3681 = vst.msk [vmem:[#allocation2 + $0x18] sm:$0xff] %vm41_vm0, %v3675_v2 }
0x237c   :  { %3680 = vst.msk [vmem:[#allocation2 + $0x10] sm:$0xff] %vm41_vm0, %v3670_v51 }
0x237d   :  { %4792 = shalt.err (!%p4789_p4)
}
0x237e   :  { %s4793_s21 = scalar_lea.hbm %s5474_s5, 512 }
0x237f   :  { %p4794_p5 = scmp.ne.s32.totalorder %s5474_s5, %s4793_s21  ;;  %p4797_p6 = scmp.lt.u32.totalorder %s4793_s21, %s5474_s5 }
0x2381   :  { %p4799_p7 = pnand %p4797_p6, %p4794_p5 }
0x2383   :  { %4802 = shalt.err (!%p4799_p7)
}
0x2384   :  { %s4836_s24 = smov 128  }
0x2385   :  { %3693 = dma.vmem_to_hbm [thread:$0]  %s3688_s4, 512, %s5474_s5, [#allocation3], %s4836_s24, %s4836_s24, %s4829_s0  }
0x2386   :  { %4803 = dma.done.wait [#allocation3], 512  }
0x2387   :  { %4804 = vsyncadd [#allocation3], 4294966784 }
0x2388   :  { %3697 = vsyncpa [#allocation3], 1 }

</bundles_post_ra>
